<compile_context>
chip_gen: v7x
topology: tpu7x:2x2x1
jax: 0.10.0
libtpu: 0.0.40
codegen_flags: <defaults>
</compile_context>

<pallas_src>
from functools import partial

import numpy as np
import jax
import jax.numpy as jnp
from jax.experimental import pallas as pl
from jax.experimental.pallas import tpu as pltpu

IMAGENET_MEAN = (0.485, 0.456, 0.406)
IMAGENET_STD = (0.229, 0.224, 0.225)


# ----------------------------------------------------------------------------
# Dense (HW, HW) Kronecker DFT matrices with fftshift / ifftshift folded in,
# in row-vector form (planes are rows, pixels are lanes):
#   spec_row = x_row @ (Kf_r + i Kf_i)  ==  vec_rowmajor(fftshift(fft2(X)))
#   rec_row  = s_row @ (Ki_r + i Ki_i)  ==  vec_rowmajor(ifft2(ifftshift(S)))
# Built once at trace time (H, W static).
# ----------------------------------------------------------------------------
def _kron_shifted_dft_mats(H, W):
    def fwd(n):  # fftshift folded on the output index: Fs = roll(F, n//2, axis=0)
        k = np.arange(n)
        F = np.exp(-2j * np.pi * np.outer(k, k) / n)
        return np.roll(F, n // 2, axis=0)

    def inv(n):  # ifftshift folded on the input index: Gs = roll(G, n//2, axis=1)
        k = np.arange(n)
        G = np.exp(2j * np.pi * np.outer(k, k) / n) / n
        return np.roll(G, n // 2, axis=1)

    Kf = np.kron(fwd(H), fwd(W)).T     # column form K acts on vec(X); .T -> row form
    Ki = np.kron(inv(H), inv(W)).T
    f32 = lambda a: jnp.asarray(np.ascontiguousarray(a), jnp.float32)
    return f32(Kf.real), f32(Kf.imag), f32(Ki.real), f32(Ki.imag)


# ----------------------------------------------------------------------------
# Fused kernel (one grid step per batch element):
#   corruption (masked shifted 2-D DFT round trip) + clamp
#   -> ImageNet normalization of corrupted & clean image
#   -> encoder (1x1 conv 3->64 + ReLU) + SSIE decoder (64->16 -> 16->3)
#   -> masked frequency-loss numerator (criterion1 stand-in, 'masked' target)
# Layout: channels in sublanes, all H*W pixels in lanes (lane-dense).
# ----------------------------------------------------------------------------
def _ifp_fused_kernel(x_ref, m_ref, mean_ref, istd_ref,
                      kfr_ref, kfi_ref, kir_ref, kii_ref,
                      w1_ref, b1_ref, w2_ref, b2_ref, w3_ref, b3_ref,
                      xin_ref, xc_ref, xout_ref, loss_ref, *, hw_inv):
    f32 = jnp.float32
    x = x_ref[...]                      # (C, HW)  one batch element's planes
    m = m_ref[...]                      # (1, HW)  frequency mask (broadcast over C)
    kfr = kfr_ref[...]                  # (HW, HW) forward shifted DFT (real part)
    kfi = kfi_ref[...]                  # (HW, HW) forward shifted DFT (imag part)

    # --- frequency corruption: Re(ifft2(ifftshift(fftshift(fft2(x)) * m))) ---
    # real input -> 2 matmuls forward; real-part output -> 2 matmuls inverse
    fr = jnp.dot(x, kfr, preferred_element_type=f32) * m
    fi = jnp.dot(x, kfi, preferred_element_type=f32) * m
    xc = (jnp.dot(fr, kir_ref[...], preferred_element_type=f32)
          - jnp.dot(fi, kii_ref[...], preferred_element_type=f32))
    xc = jnp.clip(xc, 0.0, 1.0)

    # --- fused ImageNet normalization (corrupted image + clean target) -------
    mean = mean_ref[...]                # (C, 1)
    istd = istd_ref[...]                # (C, 1)  precomputed 1/std
    xcn = (xc - mean) * istd
    xin = (x - mean) * istd
    xc_ref[...] = xcn
    xin_ref[...] = xin

    # --- encoder (1x1 conv C->64 + ReLU) + SSIE decoder (64->16, 16->3) ------
    h = jnp.dot(w1_ref[...], xcn, preferred_element_type=f32) + b1_ref[...]
    h = jnp.maximum(h, 0.0)             # synthetic encoder ReLU
    h = jnp.dot(w2_ref[...], h, preferred_element_type=f32) + b2_ref[...]
    rec = jnp.dot(w3_ref[...], h, preferred_element_type=f32) + b3_ref[...]
    xout_ref[...] = rec

    # --- masked frequency-loss numerator --------------------------------------
    # DFT linearity: F(rec) - F(target) = F(rec - target); ortho normalization
    # (1/sqrt(HW) per transform) folded in as the scalar hw_inv on |.|^2.
    d = rec - xin
    gr = jnp.dot(d, kfr, preferred_element_type=f32)
    gi = jnp.dot(d, kfi, preferred_element_type=f32)
    wgt = 1.0 - m
    e = jnp.sum((gr * gr + gi * gi) * wgt, axis=1, keepdims=True)   # (C, 1)
    loss_ref[...] = jnp.sum(e, axis=0, keepdims=True) * hw_inv       # (1, 1)


# ----------------------------------------------------------------------------
# IFP forward pass (filter_type='IFP', recover_target_type='masked').
# Returns (loss, x_in, x_corrupted, x_out) exactly like the PyTorch module.
# All inter-kernel plumbing is pure row-major reshapes of NCHW (no transposes).
# ----------------------------------------------------------------------------
def ifp_forward(x, mask, params):
    B, C, H, W = x.shape
    HW = H * W
    w1, b1, w2, b2, w3, b3 = params
    C_out = w3.shape[0]
    in_chans = C

    kfr, kfi, kir, kii = _kron_shifted_dft_mats(H, W)
    mean_col = jnp.asarray(np.asarray(IMAGENET_MEAN[:C], np.float32).reshape(C, 1))
    istd_col = jnp.asarray(
        (1.0 / np.asarray(IMAGENET_STD[:C], np.float32)).reshape(C, 1))

    # lane-dense slabs: planes in sublanes, H*W pixels in lanes (pure reshapes)
    x_slab = x.reshape(B, C, HW)
    m_slab = mask.reshape(B, 1, HW)     # mask is NOT duplicated over channels

    batch_spec = lambda rows: pl.BlockSpec((None, rows, HW), lambda b: (b, 0, 0))
    const_spec = lambda a: pl.BlockSpec(a.shape, lambda b: (0,) * a.ndim)

    xin_s, xc_s, xout_s, loss_parts = pl.pallas_call(
        partial(_ifp_fused_kernel, hw_inv=1.0 / HW),
        out_shape=(jax.ShapeDtypeStruct((B, C, HW), jnp.float32),
                   jax.ShapeDtypeStruct((B, C, HW), jnp.float32),
                   jax.ShapeDtypeStruct((B, C_out, HW), jnp.float32),
                   jax.ShapeDtypeStruct((B, 1, 1), jnp.float32)),
        grid=(B,),
        in_specs=[batch_spec(C), batch_spec(1),
                  const_spec(mean_col), const_spec(istd_col),
                  const_spec(kfr), const_spec(kfi),
                  const_spec(kir), const_spec(kii),
                  const_spec(w1), const_spec(b1),
                  const_spec(w2), const_spec(b2),
                  const_spec(w3), const_spec(b3)],
        out_specs=(batch_spec(C), batch_spec(C), batch_spec(C_out),
                   pl.BlockSpec((None, 1, 1), lambda b: (b, 0, 0))),
        compiler_params=pltpu.CompilerParams(
            dimension_semantics=("parallel",)),
    )(x_slab, m_slab, mean_col, istd_col, kfr, kfi, kir, kii,
      w1, b1, w2, b2, w3, b3)

    # loss = sum(loss_recon * (1-mask)) / sum(1-mask) / in_chans / patch_num
    num = jnp.sum(loss_parts)
    denom = jnp.sum(1.0 - mask)
    patch_num = 1                       # FREQ_LOSS.PATCH_FACTOR == 1
    loss = jnp.where(denom > 0, num / jnp.maximum(denom, 1e-8), 0.0)
    loss = loss / in_chans / patch_num

    x_in = xin_s.reshape(B, C, H, W)           # normalized clean image
    x_corrupted = xc_s.reshape(B, C, H, W)     # normalized corrupted image
    x_out = xout_s.reshape(B, C_out, H, W)     # reconstruction
    return loss, x_in, x_corrupted, x_out


def lowpass_mask(B, H, W, radius):
    yy = jnp.arange(H, dtype=jnp.float32) - H // 2
    xx = jnp.arange(W, dtype=jnp.float32) - W // 2
    dist = jnp.sqrt(yy[:, None] ** 2 + xx[None, :] ** 2)
    m = (dist <= radius).astype(jnp.float32)
    return jnp.broadcast_to(m, (B, H, W))


def init_params(key):
    k1, k2, k3 = jax.random.split(key, 3)
    num_features = 64
    # 1x1-conv weights stored (C_out, C_in); biases (C_out, 1)
    w_enc = jax.random.normal(k1, (num_features, 3), jnp.float32) * 0.1
    b_enc = jnp.zeros((num_features, 1), jnp.float32)
    w_d1 = jax.random.normal(k2, (num_features // 4, num_features), jnp.float32) * 0.1
    b_d1 = jnp.zeros((num_features // 4, 1), jnp.float32)
    w_d2 = jax.random.normal(k3, (3, num_features // 4), jnp.float32) * 0.1
    b_d2 = jnp.zeros((3, 1), jnp.float32)
    return (w_enc, b_enc, w_d1, b_d1, w_d2, b_d2)


if __name__ == "__main__":
    key = jax.random.PRNGKey(0)
    k_x, k_p = jax.random.split(key)

    B, C, H, W = 2, 3, 16, 16
    x = jax.random.uniform(k_x, (B, C, H, W), jnp.float32)   # images in [0, 1]
    mask = lowpass_mask(B, H, W, radius=4.0)                 # MASK_RADIUS1 = 4
    params = init_params(k_p)

    fwd = jax.jit(ifp_forward)
    loss, x_in, x_corrupted, x_out = fwd(x, mask, params)
    jax.block_until_ready((loss, x_in, x_corrupted, x_out))
    print("KERNEL_OK")
</pallas_src>

<mosaic_0001>
module attributes {stable_mosaic.version = 11 : i64} {
  func.func @_ifp_fused_kernel(%arg0: i32, %arg1: memref<1x3x256xf32, #tpu.memory_space<vmem>>, %arg2: memref<1x1x256xf32, #tpu.memory_space<vmem>>, %arg3: memref<3x1xf32, #tpu.memory_space<vmem>>, %arg4: memref<3x1xf32, #tpu.memory_space<vmem>>, %arg5: memref<256x256xf32, #tpu.memory_space<vmem>>, %arg6: memref<256x256xf32, #tpu.memory_space<vmem>>, %arg7: memref<256x256xf32, #tpu.memory_space<vmem>>, %arg8: memref<256x256xf32, #tpu.memory_space<vmem>>, %arg9: memref<64x3xf32, #tpu.memory_space<vmem>>, %arg10: memref<64x1xf32, #tpu.memory_space<vmem>>, %arg11: memref<16x64xf32, #tpu.memory_space<vmem>>, %arg12: memref<16x1xf32, #tpu.memory_space<vmem>>, %arg13: memref<3x16xf32, #tpu.memory_space<vmem>>, %arg14: memref<3x1xf32, #tpu.memory_space<vmem>>, %arg15: memref<1x3x256xf32, #tpu.memory_space<vmem>>, %arg16: memref<1x3x256xf32, #tpu.memory_space<vmem>>, %arg17: memref<1x3x256xf32, #tpu.memory_space<vmem>>, %arg18: memref<1x1x1xf32, #tpu.memory_space<vmem>>) attributes {dimension_semantics = [#tpu.dimension_semantics<parallel>], iteration_bounds = array<i64: 2>, scalar_prefetch = 0 : i64, scratch_operands = 0 : i64, tpu.core_type = #tpu.core_type<tc>, window_params = [{transform_indices = @transform_0, window_bounds = array<i64: 1, 3, 256>}, {transform_indices = @transform_1, window_bounds = array<i64: 1, 1, 256>}, {pipeline_mode = #tpu.pipeline_mode<synchronous>, transform_indices = @transform_2, window_bounds = array<i64: 3, 1>}, {pipeline_mode = #tpu.pipeline_mode<synchronous>, transform_indices = @transform_3, window_bounds = array<i64: 3, 1>}, {pipeline_mode = #tpu.pipeline_mode<synchronous>, transform_indices = @transform_4, window_bounds = array<i64: 256, 256>}, {pipeline_mode = #tpu.pipeline_mode<synchronous>, transform_indices = @transform_5, window_bounds = array<i64: 256, 256>}, {pipeline_mode = #tpu.pipeline_mode<synchronous>, transform_indices = @transform_6, window_bounds = array<i64: 256, 256>}, {pipeline_mode = #tpu.pipeline_mode<synchronous>, transform_indices = @transform_7, window_bounds = array<i64: 256, 256>}, {pipeline_mode = #tpu.pipeline_mode<synchronous>, transform_indices = @transform_8, window_bounds = array<i64: 64, 3>}, {pipeline_mode = #tpu.pipeline_mode<synchronous>, transform_indices = @transform_9, window_bounds = array<i64: 64, 1>}, {pipeline_mode = #tpu.pipeline_mode<synchronous>, transform_indices = @transform_10, window_bounds = array<i64: 16, 64>}, {pipeline_mode = #tpu.pipeline_mode<synchronous>, transform_indices = @transform_11, window_bounds = array<i64: 16, 1>}, {pipeline_mode = #tpu.pipeline_mode<synchronous>, transform_indices = @transform_12, window_bounds = array<i64: 3, 16>}, {pipeline_mode = #tpu.pipeline_mode<synchronous>, transform_indices = @transform_13, window_bounds = array<i64: 3, 1>}, {transform_indices = @transform_14, window_bounds = array<i64: 1, 3, 256>}, {transform_indices = @transform_15, window_bounds = array<i64: 1, 3, 256>}, {transform_indices = @transform_16, window_bounds = array<i64: 1, 3, 256>}, {transform_indices = @transform_17, window_bounds = array<i64: 1, 1, 1>}]} {
    %c0 = arith.constant 0 : index
    %c0_0 = arith.constant 0 : index
    %c0_1 = arith.constant 0 : index
    %0 = vector.load %arg1[%c0, %c0_0, %c0_1] : memref<1x3x256xf32, #tpu.memory_space<vmem>>, vector<1x3x256xf32>
    %1 = vector.shape_cast %0 : vector<1x3x256xf32> to vector<3x256xf32>
    %c0_2 = arith.constant 0 : index
    %c0_3 = arith.constant 0 : index
    %c0_4 = arith.constant 0 : index
    %2 = vector.load %arg2[%c0_2, %c0_3, %c0_4] : memref<1x1x256xf32, #tpu.memory_space<vmem>>, vector<1x1x256xf32>
    %3 = vector.shape_cast %2 : vector<1x1x256xf32> to vector<1x256xf32>
    %c0_5 = arith.constant 0 : index
    %c0_6 = arith.constant 0 : index
    %4 = vector.load %arg5[%c0_5, %c0_6] : memref<256x256xf32, #tpu.memory_space<vmem>>, vector<256x256xf32>
    %c0_7 = arith.constant 0 : index
    %c0_8 = arith.constant 0 : index
    %5 = vector.load %arg6[%c0_7, %c0_8] : memref<256x256xf32, #tpu.memory_space<vmem>>, vector<256x256xf32>
    %cst = arith.constant dense<0.000000e+00> : vector<3x256xf32>
    %6 = tpu.matmul %1, %4, %cst {dimension_numbers = #tpu.dot_dimension_numbers<[1], [0], [0], [1], [0, 0, 1, 1], [], []>} : vector<3x256xf32>, vector<256x256xf32>, vector<3x256xf32> -> vector<3x256xf32>
    %7 = vector.broadcast %3 : vector<1x256xf32> to vector<3x256xf32>
    %8 = arith.mulf %6, %7 : vector<3x256xf32>
    %cst_9 = arith.constant dense<0.000000e+00> : vector<3x256xf32>
    %9 = tpu.matmul %1, %5, %cst_9 {dimension_numbers = #tpu.dot_dimension_numbers<[1], [0], [0], [1], [0, 0, 1, 1], [], []>} : vector<3x256xf32>, vector<256x256xf32>, vector<3x256xf32> -> vector<3x256xf32>
    %10 = vector.broadcast %3 : vector<1x256xf32> to vector<3x256xf32>
    %11 = arith.mulf %9, %10 : vector<3x256xf32>
    %c0_10 = arith.constant 0 : index
    %c0_11 = arith.constant 0 : index
    %12 = vector.load %arg7[%c0_10, %c0_11] : memref<256x256xf32, #tpu.memory_space<vmem>>, vector<256x256xf32>
    %cst_12 = arith.constant dense<0.000000e+00> : vector<3x256xf32>
    %13 = tpu.matmul %8, %12, %cst_12 {dimension_numbers = #tpu.dot_dimension_numbers<[1], [0], [0], [1], [0, 0, 1, 1], [], []>} : vector<3x256xf32>, vector<256x256xf32>, vector<3x256xf32> -> vector<3x256xf32>
    %c0_13 = arith.constant 0 : index
    %c0_14 = arith.constant 0 : index
    %14 = vector.load %arg8[%c0_13, %c0_14] : memref<256x256xf32, #tpu.memory_space<vmem>>, vector<256x256xf32>
    %cst_15 = arith.constant dense<0.000000e+00> : vector<3x256xf32>
    %15 = tpu.matmul %11, %14, %cst_15 {dimension_numbers = #tpu.dot_dimension_numbers<[1], [0], [0], [1], [0, 0, 1, 1], [], []>} : vector<3x256xf32>, vector<256x256xf32>, vector<3x256xf32> -> vector<3x256xf32>
    %16 = arith.subf %13, %15 : vector<3x256xf32>
    %cst_16 = arith.constant 0.000000e+00 : f32
    %cst_17 = arith.constant 1.000000e+00 : f32
    %17 = vector.broadcast %cst_16 : f32 to vector<3x256xf32>
    %18 = arith.maximumf %17, %16 : vector<3x256xf32>
    %19 = vector.broadcast %cst_17 : f32 to vector<3x256xf32>
    %20 = arith.minimumf %19, %18 : vector<3x256xf32>
    %c0_18 = arith.constant 0 : index
    %c0_19 = arith.constant 0 : index
    %21 = vector.load %arg3[%c0_18, %c0_19] : memref<3x1xf32, #tpu.memory_space<vmem>>, vector<3x1xf32>
    %c0_20 = arith.constant 0 : index
    %c0_21 = arith.constant 0 : index
    %22 = vector.load %arg4[%c0_20, %c0_21] : memref<3x1xf32, #tpu.memory_space<vmem>>, vector<3x1xf32>
    %23 = vector.broadcast %21 : vector<3x1xf32> to vector<3x256xf32>
    %24 = arith.subf %20, %23 : vector<3x256xf32>
    %25 = vector.broadcast %22 : vector<3x1xf32> to vector<3x256xf32>
    %26 = arith.mulf %24, %25 : vector<3x256xf32>
    %27 = vector.broadcast %21 : vector<3x1xf32> to vector<3x256xf32>
    %28 = arith.subf %1, %27 : vector<3x256xf32>
    %29 = vector.broadcast %22 : vector<3x1xf32> to vector<3x256xf32>
    %30 = arith.mulf %28, %29 : vector<3x256xf32>
    %c0_22 = arith.constant 0 : index
    %c0_23 = arith.constant 0 : index
    %c0_24 = arith.constant 0 : index
    %31 = vector.load %arg16[%c0_22, %c0_23, %c0_24] : memref<1x3x256xf32, #tpu.memory_space<vmem>>, vector<1x3x256xf32>
    %32 = vector.shape_cast %31 : vector<1x3x256xf32> to vector<3x256xf32>
    %33 = vector.shape_cast %26 : vector<3x256xf32> to vector<1x3x256xf32>
    tpu.vector_store %arg16[%c0_22, %c0_23, %c0_24], %33 {strides = array<i32>} : memref<1x3x256xf32, #tpu.memory_space<vmem>>, vector<1x3x256xf32>,
    %c0_25 = arith.constant 0 : index
    %c0_26 = arith.constant 0 : index
    %c0_27 = arith.constant 0 : index
    %34 = vector.load %arg15[%c0_25, %c0_26, %c0_27] : memref<1x3x256xf32, #tpu.memory_space<vmem>>, vector<1x3x256xf32>
    %35 = vector.shape_cast %34 : vector<1x3x256xf32> to vector<3x256xf32>
    %36 = vector.shape_cast %30 : vector<3x256xf32> to vector<1x3x256xf32>
    tpu.vector_store %arg15[%c0_25, %c0_26, %c0_27], %36 {strides = array<i32>} : memref<1x3x256xf32, #tpu.memory_space<vmem>>, vector<1x3x256xf32>,
    %c0_28 = arith.constant 0 : index
    %c0_29 = arith.constant 0 : index
    %37 = vector.load %arg9[%c0_28, %c0_29] : memref<64x3xf32, #tpu.memory_space<vmem>>, vector<64x3xf32>
    %cst_30 = arith.constant dense<0.000000e+00> : vector<64x256xf32>
    %38 = tpu.matmul %37, %26, %cst_30 {dimension_numbers = #tpu.dot_dimension_numbers<[1], [0], [0], [1], [0, 0, 1, 1], [], []>} : vector<64x3xf32>, vector<3x256xf32>, vector<64x256xf32> -> vector<64x256xf32>
    %c0_31 = arith.constant 0 : index
    %c0_32 = arith.constant 0 : index
    %39 = vector.load %arg10[%c0_31, %c0_32] : memref<64x1xf32, #tpu.memory_space<vmem>>, vector<64x1xf32>
    %40 = vector.broadcast %39 : vector<64x1xf32> to vector<64x256xf32>
    %41 = arith.addf %38, %40 : vector<64x256xf32>
    %cst_33 = arith.constant 0.000000e+00 : f32
    %42 = vector.broadcast %cst_33 : f32 to vector<64x256xf32>
    %43 = arith.maximumf %41, %42 : vector<64x256xf32>
    %c0_34 = arith.constant 0 : index
    %c0_35 = arith.constant 0 : index
    %44 = vector.load %arg11[%c0_34, %c0_35] : memref<16x64xf32, #tpu.memory_space<vmem>>, vector<16x64xf32>
    %cst_36 = arith.constant dense<0.000000e+00> : vector<16x256xf32>
    %45 = tpu.matmul %44, %43, %cst_36 {dimension_numbers = #tpu.dot_dimension_numbers<[1], [0], [0], [1], [0, 0, 1, 1], [], []>} : vector<16x64xf32>, vector<64x256xf32>, vector<16x256xf32> -> vector<16x256xf32>
    %c0_37 = arith.constant 0 : index
    %c0_38 = arith.constant 0 : index
    %46 = vector.load %arg12[%c0_37, %c0_38] : memref<16x1xf32, #tpu.memory_space<vmem>>, vector<16x1xf32>
    %47 = vector.broadcast %46 : vector<16x1xf32> to vector<16x256xf32>
    %48 = arith.addf %45, %47 : vector<16x256xf32>
    %c0_39 = arith.constant 0 : index
    %c0_40 = arith.constant 0 : index
    %49 = vector.load %arg13[%c0_39, %c0_40] : memref<3x16xf32, #tpu.memory_space<vmem>>, vector<3x16xf32>
    %cst_41 = arith.constant dense<0.000000e+00> : vector<3x256xf32>
    %50 = tpu.matmul %49, %48, %cst_41 {dimension_numbers = #tpu.dot_dimension_numbers<[1], [0], [0], [1], [0, 0, 1, 1], [], []>} : vector<3x16xf32>, vector<16x256xf32>, vector<3x256xf32> -> vector<3x256xf32>
    %c0_42 = arith.constant 0 : index
    %c0_43 = arith.constant 0 : index
    %51 = vector.load %arg14[%c0_42, %c0_43] : memref<3x1xf32, #tpu.memory_space<vmem>>, vector<3x1xf32>
    %52 = vector.broadcast %51 : vector<3x1xf32> to vector<3x256xf32>
    %53 = arith.addf %50, %52 : vector<3x256xf32>
    %c0_44 = arith.constant 0 : index
    %c0_45 = arith.constant 0 : index
    %c0_46 = arith.constant 0 : index
    %54 = vector.load %arg17[%c0_44, %c0_45, %c0_46] : memref<1x3x256xf32, #tpu.memory_space<vmem>>, vector<1x3x256xf32>
    %55 = vector.shape_cast %54 : vector<1x3x256xf32> to vector<3x256xf32>
    %56 = vector.shape_cast %53 : vector<3x256xf32> to vector<1x3x256xf32>
    tpu.vector_store %arg17[%c0_44, %c0_45, %c0_46], %56 {strides = array<i32>} : memref<1x3x256xf32, #tpu.memory_space<vmem>>, vector<1x3x256xf32>,
    %57 = arith.subf %53, %30 : vector<3x256xf32>
    %cst_47 = arith.constant dense<0.000000e+00> : vector<3x256xf32>
    %58 = tpu.matmul %57, %4, %cst_47 {dimension_numbers = #tpu.dot_dimension_numbers<[1], [0], [0], [1], [0, 0, 1, 1], [], []>} : vector<3x256xf32>, vector<256x256xf32>, vector<3x256xf32> -> vector<3x256xf32>
    %cst_48 = arith.constant dense<0.000000e+00> : vector<3x256xf32>
    %59 = tpu.matmul %57, %5, %cst_48 {dimension_numbers = #tpu.dot_dimension_numbers<[1], [0], [0], [1], [0, 0, 1, 1], [], []>} : vector<3x256xf32>, vector<256x256xf32>, vector<3x256xf32> -> vector<3x256xf32>
    %cst_49 = arith.constant 1.000000e+00 : f32
    %60 = vector.broadcast %cst_49 : f32 to vector<1x256xf32>
    %61 = arith.subf %60, %3 : vector<1x256xf32>
    %62 = arith.mulf %58, %58 : vector<3x256xf32>
    %63 = arith.mulf %59, %59 : vector<3x256xf32>
    %64 = arith.addf %62, %63 : vector<3x256xf32>
    %65 = vector.broadcast %61 : vector<1x256xf32> to vector<3x256xf32>
    %66 = arith.mulf %64, %65 : vector<3x256xf32>
    %cst_50 = arith.constant dense<0.000000e+00> : vector<3xf32>
    %67 = vector.multi_reduction <add>, %66, %cst_50 [1] : vector<3x256xf32> to vector<3xf32>
    %68 = vector.shape_cast %67 : vector<3xf32> to vector<3x1xf32>
    %cst_51 = arith.constant dense<0.000000e+00> : vector<1xf32>
    %69 = vector.multi_reduction <add>, %68, %cst_51 [0] : vector<3x1xf32> to vector<1xf32>
    %70 = vector.shape_cast %69 : vector<1xf32> to vector<1x1xf32>
    %cst_52 = arith.constant 3.906250e-03 : f32
    %71 = vector.broadcast %cst_52 : f32 to vector<1x1xf32>
    %72 = arith.mulf %70, %71 : vector<1x1xf32>
    %c0_53 = arith.constant 0 : index
    %c0_54 = arith.constant 0 : index
    %c0_55 = arith.constant 0 : index
    %73 = vector.load %arg18[%c0_53, %c0_54, %c0_55] : memref<1x1x1xf32, #tpu.memory_space<vmem>>, vector<1x1x1xf32>
    %74 = vector.shape_cast %73 : vector<1x1x1xf32> to vector<1x1xf32>
    %75 = vector.shape_cast %72 : vector<1x1xf32> to vector<1x1x1xf32>
    tpu.vector_store %arg18[%c0_53, %c0_54, %c0_55], %75 {strides = array<i32>} : memref<1x1x1xf32, #tpu.memory_space<vmem>>, vector<1x1x1xf32>,
    return
  }
  func.func @transform_0(%arg0: i32) -> (i32, i32, i32) {
    %c0_i32 = arith.constant 0 : i32
    %c0_i32_0 = arith.constant 0 : i32
    %c0_i32_1 = arith.constant 0 : i32
    return %arg0, %c0_i32, %c0_i32_0 : i32, i32, i32
  }
  func.func @transform_1(%arg0: i32) -> (i32, i32, i32) {
    %c0_i32 = arith.constant 0 : i32
    %c0_i32_0 = arith.constant 0 : i32
    %c0_i32_1 = arith.constant 0 : i32
    return %arg0, %c0_i32, %c0_i32_0 : i32, i32, i32
  }
  func.func @transform_2(%arg0: i32) -> (i32, i32) {
    %c0_i32 = arith.constant 0 : i32
    %c0_i32_0 = arith.constant 0 : i32
    %c0_i32_1 = arith.constant 0 : i32
    return %c0_i32, %c0_i32_0 : i32, i32
  }
  func.func @transform_3(%arg0: i32) -> (i32, i32) {
    %c0_i32 = arith.constant 0 : i32
    %c0_i32_0 = arith.constant 0 : i32
    %c0_i32_1 = arith.constant 0 : i32
    return %c0_i32, %c0_i32_0 : i32, i32
  }
  func.func @transform_4(%arg0: i32) -> (i32, i32) {
    %c0_i32 = arith.constant 0 : i32
    %c0_i32_0 = arith.constant 0 : i32
    %c0_i32_1 = arith.constant 0 : i32
    return %c0_i32, %c0_i32_0 : i32, i32
  }
  func.func @transform_5(%arg0: i32) -> (i32, i32) {
    %c0_i32 = arith.constant 0 : i32
    %c0_i32_0 = arith.constant 0 : i32
    %c0_i32_1 = arith.constant 0 : i32
    return %c0_i32, %c0_i32_0 : i32, i32
  }
  func.func @transform_6(%arg0: i32) -> (i32, i32) {
    %c0_i32 = arith.constant 0 : i32
    %c0_i32_0 = arith.constant 0 : i32
    %c0_i32_1 = arith.constant 0 : i32
    return %c0_i32, %c0_i32_0 : i32, i32
  }
  func.func @transform_7(%arg0: i32) -> (i32, i32) {
    %c0_i32 = arith.constant 0 : i32
    %c0_i32_0 = arith.constant 0 : i32
    %c0_i32_1 = arith.constant 0 : i32
    return %c0_i32, %c0_i32_0 : i32, i32
  }
  func.func @transform_8(%arg0: i32) -> (i32, i32) {
    %c0_i32 = arith.constant 0 : i32
    %c0_i32_0 = arith.constant 0 : i32
    %c0_i32_1 = arith.constant 0 : i32
    return %c0_i32, %c0_i32_0 : i32, i32
  }
  func.func @transform_9(%arg0: i32) -> (i32, i32) {
    %c0_i32 = arith.constant 0 : i32
    %c0_i32_0 = arith.constant 0 : i32
    %c0_i32_1 = arith.constant 0 : i32
    return %c0_i32, %c0_i32_0 : i32, i32
  }
  func.func @transform_10(%arg0: i32) -> (i32, i32) {
    %c0_i32 = arith.constant 0 : i32
    %c0_i32_0 = arith.constant 0 : i32
    %c0_i32_1 = arith.constant 0 : i32
    return %c0_i32, %c0_i32_0 : i32, i32
  }
  func.func @transform_11(%arg0: i32) -> (i32, i32) {
    %c0_i32 = arith.constant 0 : i32
    %c0_i32_0 = arith.constant 0 : i32
    %c0_i32_1 = arith.constant 0 : i32
    return %c0_i32, %c0_i32_0 : i32, i32
  }
  func.func @transform_12(%arg0: i32) -> (i32, i32) {
    %c0_i32 = arith.constant 0 : i32
    %c0_i32_0 = arith.constant 0 : i32
    %c0_i32_1 = arith.constant 0 : i32
    return %c0_i32, %c0_i32_0 : i32, i32
  }
  func.func @transform_13(%arg0: i32) -> (i32, i32) {
    %c0_i32 = arith.constant 0 : i32
    %c0_i32_0 = arith.constant 0 : i32
    %c0_i32_1 = arith.constant 0 : i32
    return %c0_i32, %c0_i32_0 : i32, i32
  }
  func.func @transform_14(%arg0: i32) -> (i32, i32, i32) {
    %c0_i32 = arith.constant 0 : i32
    %c0_i32_0 = arith.constant 0 : i32
    %c0_i32_1 = arith.constant 0 : i32
    return %arg0, %c0_i32, %c0_i32_0 : i32, i32, i32
  }
  func.func @transform_15(%arg0: i32) -> (i32, i32, i32) {
    %c0_i32 = arith.constant 0 : i32
    %c0_i32_0 = arith.constant 0 : i32
    %c0_i32_1 = arith.constant 0 : i32
    return %arg0, %c0_i32, %c0_i32_0 : i32, i32, i32
  }
  func.func @transform_16(%arg0: i32) -> (i32, i32, i32) {
    %c0_i32 = arith.constant 0 : i32
    %c0_i32_0 = arith.constant 0 : i32
    %c0_i32_1 = arith.constant 0 : i32
    return %arg0, %c0_i32, %c0_i32_0 : i32, i32, i32
  }
  func.func @transform_17(%arg0: i32) -> (i32, i32, i32) {
    %c0_i32 = arith.constant 0 : i32
    %c0_i32_0 = arith.constant 0 : i32
    %c0_i32_1 = arith.constant 0 : i32
    return %arg0, %c0_i32, %c0_i32_0 : i32, i32, i32
  }
}

</mosaic_0001>

<bundles_post_ra>
// kernel: ifp_forward.1
= control target key start
LH: loop header
LB: loop body
LE: loop exit
PB: predicated region body
PF: predicated region fallthrough
CT: control target
= control target key end

     0   :  { %s3348_s0 = inlined_call_operand.vmem [shape: f32[2,3,256], index: 0, kind: input, shape index: {}]   ;;  %s3349_s1 = inlined_call_operand.vmem [shape: f32[2,1,256], index: 1, kind: input, shape index: {}]   ;;  %s3350_s2 = inlined_call_operand.vmem [shape: f32[3,1], index: 2, kind: input, shape index: {}]   ;;  %s3351_s3 = inlined_call_operand.vmem [shape: f32[3,1], index: 3, kind: input, shape index: {}]   ;;  %s3352_s4 = inlined_call_operand.hbm [shape: f32[256,256], index: 4, kind: input, shape index: {}]   ;;  %s3353_s5 = inlined_call_operand.hbm [shape: f32[256,256], index: 5, kind: input, shape index: {}]   ;;  %s3354_s6 = inlined_call_operand.hbm [shape: f32[256,256], index: 6, kind: input, shape index: {}]   ;;  %s3355_s7 = inlined_call_operand.hbm [shape: f32[256,256], index: 7, kind: input, shape index: {}]   ;;  %s3356_s8 = inlined_call_operand.vmem [shape: f32[64,3], index: 8, kind: input, shape index: {}]   ;;  %s3357_s9 = inlined_call_operand.vmem [shape: f32[64,1], index: 9, kind: input, shape index: {}]   ;;  %s3358_s10 = inlined_call_operand.vmem [shape: f32[16,64], index: 10, kind: input, shape index: {}]   ;;  %s3359_s11 = inlined_call_operand.vmem [shape: f32[16,1], index: 11, kind: input, shape index: {}]   ;;  %s3360_s12 = inlined_call_operand.vmem [shape: f32[3,16], index: 12, kind: input, shape index: {}]   ;;  %s3361_s13 = inlined_call_operand.vmem [shape: f32[3,1], index: 13, kind: input, shape index: {}]   ;;  %s3362_s14 = inlined_call_operand.vmem [shape: f32[2,3,256], index: 14, kind: output, shape index: {0}]   ;;  %s3363_s15 = inlined_call_operand.vmem [shape: f32[2,3,256], index: 15, kind: output, shape index: {1}]   ;;  %s3364_s16 = inlined_call_operand.vmem [shape: f32[2,3,256], index: 16, kind: output, shape index: {2}]   ;;  %s3365_s17 = inlined_call_operand.vmem [shape: f32[2,1,1], index: 17, kind: output, shape index: {3}]  }
   0x1   :  { %3396 = sst [smem:[#allocation39_spill]] %s3348_s0 }
   0x2   :  { %3397 = sst [smem:[#allocation40_spill]] %s3349_s1 }
   0x3   :  { %3398 = sst [smem:[#allocation41_spill]] %s3358_s10 }
   0x4   :  { %3399 = sst [smem:[#allocation42_spill]] %s3360_s12 }
   0x5   :  { %3400 = sst [smem:[#allocation43_spill]] %s3364_s16 }
   0x6   :  { %3401 = sst [smem:[#allocation44_spill]] %s3365_s17 }
   0x7   :  { %23 = vsyncpa [#allocation3], 0 }
   0x8   :  { %24 = vsyncpa [#allocation5], 0 }
   0x9   :  { %25 = vsyncpa [#allocation8], 0  ;;  %s2778_s24 = smov 0  }
   0xa LB: > { %3402 = sst [smem:[#allocation12_spill]] %s2677_s24  ;;  %s2784_s25 = sadd.s32 4294967295, %s2677_s24   ;;  %s2677_s24 = sphi %s2778_s24, %s31_s24  }
   0xb   : > { %p2047_p0 = scmp.ge.s32.totalorder %s2677_s24, 1  ;;  %p444_p1 = scmp.lt.s32.totalorder %s2677_s24, 3 }
   0xc   : > { %p3368_p2 = scmp.eq.s32.totalorder %s2784_s25, 0  ;;  %s2679_s27 = smov [#allocation4]  }
   0xd   : > { %p2789_p3 = pnand %p2047_p0, %p444_p1  ;;  %s475_s28 = sshll.u32 %s2679_s27, 4  ;;  %s2793_s28 = int_to_ptr.vmem [resolvable:$true] %s475_s28 }
   0xe   : > { %s2680_s29 = smov [#allocation2]   ;;  %s2681_s18 = smov [#allocation6]  }
   0xf   : > { %s3403_s26 = scalar_select %p2789_p3, 1, 0 }
  0x10   : > { %p2506_p4 = pneg %p2789_p3  ;;  %s462_s0 = sshll.u32 %s2680_s29, 4  ;;  %s2797_s0 = int_to_ptr.vmem [resolvable:$true] %s462_s0 }
  0x11   : > { %s488_s19 = sshll.u32 %s2681_s18, 4  ;;  %s2682_s1 = smov [#allocation7]   ;;  %s2805_s19 = int_to_ptr.vmem [resolvable:$true] %s488_s19 }
  0x12   : > { %p2801_p5 = pnand %p3368_p2, %p2506_p4  ;;  %s2807_s20 = sshll.u32 %s2682_s1, 4  ;;  %s502_s20 = int_to_ptr.vmem [resolvable:$true] %s2807_s20 }
  0x13   : > { %s2547_s23 = scalar_lea.hbm %s3353_s5, 8192 }
  0x14   : > { %p2548_p6 = scmp.ne.s32.totalorder %s3353_s5, %s2547_s23  ;;  %p2817_p7 = pneg %p2801_p5 }
  0x15   : > { %p2554_p10 = scmp.lt.u32.totalorder %s2547_s23, %s3353_s5 }
  0x16   : > { %p2550_p8 = pnand %p2817_p7, %p2548_p6 }
  0x18   : > { %p2551_p9 = pneg %p2550_p8 }
  0x1a   : > { %p2556_p11 = pnand %p2554_p10, %p2551_p9 }
  0x1c   : > { %2559 = shalt.err (!%p2556_p11)
}
  0x1d   : > { %s2560_s21 = scalar_lea.vmem %s2793_s28, 8192  ;;  %p2568_p1 = scmp.lt.s32.totalorder %s2793_s28, %s2793_s28 }
  0x1e   : > { %p2561_p12 = scmp.ne.s32.totalorder %s2793_s28, %s2560_s21  ;;  %p2569_p4 = scmp.lt.s32.totalorder %s2560_s21, %s2560_s21 }
  0x20   : > { %p2563_p13 = pnand %p2561_p12, %p2817_p7  ;;  %p2570_p6 = por %p2569_p4, %p2568_p1 }
  0x22   : > { %p2564_p0 = pneg %p2563_p13 }
  0x24   : > { %p2571_p8 = pnand %p2570_p6, %p2564_p0 }
  0x26   : > { %2574 = shalt.err (!%p2571_p8)
}
  0x27   : > { %s2683_s22 = smov 256   ;;  %s2684_s23 = smov 16  }
  0x28   : > { %2512 = dma.hbm_to_vmem [thread:$0]  (!%p2801_p5), %s3353_s5, 8192, %s2793_s28, [#allocation5], %s2683_s22, %s2683_s22, %s2684_s23  }
  0x29   : > { %s2575_s21 = scalar_lea.hbm %s3352_s4, 8192 }
  0x2a   : > { %p2576_p9 = scmp.ne.s32.totalorder %s3352_s4, %s2575_s21  ;;  %p2582_p12 = scmp.lt.u32.totalorder %s2575_s21, %s3352_s4 }
  0x2c   : > { %p2578_p10 = pnand %p2576_p9, %p2817_p7 }
  0x2e   : > { %p2579_p11 = pneg %p2578_p10 }
  0x30   : > { %p2584_p13 = pnand %p2582_p12, %p2579_p11 }
  0x32   : > { %2587 = shalt.err (!%p2584_p13)
}
  0x33   : > { %s2588_s28 = scalar_lea.vmem %s2797_s0, 8192  ;;  %p2596_p6 = scmp.lt.s32.totalorder %s2797_s0, %s2797_s0 }
  0x34   : > { %p2589_p0 = scmp.ne.s32.totalorder %s2797_s0, %s2588_s28  ;;  %p2597_p8 = scmp.lt.s32.totalorder %s2588_s28, %s2588_s28 }
  0x36   : > { %p2591_p1 = pnand %p2589_p0, %p2817_p7  ;;  %p2598_p9 = por %p2597_p8, %p2596_p6 }
  0x38   : > { %p2592_p4 = pneg %p2591_p1 }
  0x3a   : > { %p2599_p10 = pnand %p2598_p9, %p2592_p4 }
  0x3c   : > { %2602 = shalt.err (!%p2599_p10)
}
  0x3d   : > { %2509 = dma.hbm_to_vmem [thread:$0]  (!%p2801_p5), %s3352_s4, 8192, %s2797_s0, [#allocation3], %s2683_s22, %s2683_s22, %s2684_s23  }
  0x3e   : > { %s2603_s27 = scalar_lea.hbm %s3354_s6, 8192 }
  0x3f   : > { %p2604_p11 = scmp.ne.s32.totalorder %s3354_s6, %s2603_s27  ;;  %p2610_p0 = scmp.lt.u32.totalorder %s2603_s27, %s3354_s6 }
  0x41   : > { %p2606_p12 = pnand %p2604_p11, %p2817_p7 }
  0x43   : > { %p2607_p13 = pneg %p2606_p12 }
  0x45   : > { %p2612_p1 = pnand %p2610_p0, %p2607_p13 }
  0x47   : > { %2615 = shalt.err (!%p2612_p1)
}
  0x48   : > { %s2616_s0 = scalar_lea.vmem %s2805_s19, 8192  ;;  %p2624_p9 = scmp.lt.s32.totalorder %s2805_s19, %s2805_s19 }
  0x49   : > { %p2617_p4 = scmp.ne.s32.totalorder %s2805_s19, %s2616_s0  ;;  %p2625_p10 = scmp.lt.s32.totalorder %s2616_s0, %s2616_s0 }
  0x4b   : > { %p2619_p6 = pnand %p2617_p4, %p2817_p7  ;;  %p2626_p11 = por %p2625_p10, %p2624_p9 }
  0x4d   : > { %p2620_p8 = pneg %p2619_p6 }
  0x4f   : > { %p2627_p12 = pnand %p2626_p11, %p2620_p8 }
  0x51   : > { %2630 = shalt.err (!%p2627_p12)
}
  0x52   : > { %2515 = dma.hbm_to_vmem [thread:$0]  (!%p2801_p5), %s3354_s6, 8192, %s2805_s19, [#allocation5], %s2683_s22, %s2683_s22, %s2684_s23  }
  0x53   : > { %s2631_s17 = scalar_lea.hbm %s3355_s7, 8192 }
  0x54   : > { %p2632_p13 = scmp.ne.s32.totalorder %s3355_s7, %s2631_s17  ;;  %p2638_p4 = scmp.lt.u32.totalorder %s2631_s17, %s3355_s7 }
  0x56   : > { %p2634_p0 = pnand %p2632_p13, %p2817_p7 }
  0x58   : > { %p2635_p1 = pneg %p2634_p0 }
  0x5a   : > { %p2640_p6 = pnand %p2638_p4, %p2635_p1 }
  0x5c   : > { %2643 = shalt.err (!%p2640_p6)
}
  0x5d   : > { %s2644_s21 = scalar_lea.vmem %s502_s20, 8192  ;;  %p2652_p11 = scmp.lt.s32.totalorder %s502_s20, %s502_s20 }
  0x5e   : > { %p2645_p8 = scmp.ne.s32.totalorder %s502_s20, %s2644_s21  ;;  %p2653_p12 = scmp.lt.s32.totalorder %s2644_s21, %s2644_s21 }
  0x60   : > { %p2647_p9 = pnand %p2645_p8, %p2817_p7  ;;  %p2654_p2 = por %p2653_p12, %p2652_p11 }
  0x62   : > { %p2648_p10 = pneg %p2647_p9 }
  0x64   : > { %p2655_p3 = pnand %p2654_p2, %p2648_p10 }
  0x66   : > { %2658 = shalt.err (!%p2655_p3)
}
  0x67   : > { %2518 = dma.hbm_to_vmem [thread:$0]  (!%p2801_p5), %s3355_s7, 8192, %s502_s20, [#allocation8], %s2683_s22, %s2683_s22, %s2684_s23  }
  0x68   : > { %p3406_p13 = scmp.ne.s32.totalorder %s3403_s26, 0 }
  0x6a   : > { %550 = sbr.rel (%p3406_p13) target bundleno = 1707 (0x6ab), region = 76 }
  0x71   : > { %p3407_p7 = scmp.eq.s32.totalorder %s2784_s25, 0 }
  0x73   : > { %2664 = dma.done.wait (%p3407_p7), [#allocation3], 8192   ;;  %p3408_p0 = pmov %p3407_p7 }
  0x75   : > { %2666 = vsyncadd (%p3408_p0), [#allocation3], 4294959104  ;;  %p3409_p2 = pmov %p3408_p0 }
  0x76   : > { %p3410_p3 = pmov %p3408_p0 }
  0x77   : > { %2668 = dma.done.wait (%p3409_p2), [#allocation5], 16384  }
  0x78   : > { %2670 = vsyncadd (%p3410_p3), [#allocation5], 4294950912  ;;  %p3411_p1 = pmov %p3408_p0 }
  0x79   : > { %p3412_p5 = pmov %p3408_p0 }
  0x7a   : > { %2672 = dma.done.wait (%p3411_p1), [#allocation8], 8192  }
  0x7b   : > { %2674 = vsyncadd (%p3412_p5), [#allocation8], 4294959104  ;;  %v661_v0 = vld [vmem:[#allocation2 + $0x8] sm:$0xff]  ;;  %v663_v1 = vld [vmem:[#allocation2 + $0x18] sm:$0xff]  ;;  %p631_p4 = scmp.lt.s32.totalorder %s2784_s25, 1  ;;  %s3428_s20 = sld [smem:[#allocation39_spill]] }
  0x7c   : > { %v725_v2 = vld [vmem:[#allocation4 + $0x8] sm:$0xff]  ;;  %v2929_v3 = vpack.c.bf16 %v663_v1, %v661_v0  ;;  %v727_v4 = vld [vmem:[#allocation4 + $0x18] sm:$0xff]  ;;  %v660_v5 = vld [vmem:[#allocation2] sm:$0xff]  ;;  %s3440_s23 = sld [smem:[#allocation40_spill]]  ;;  %vm1345_vm0 = vcmask 1042432   ;;  %vm1320_vm1 = vcmask 23552  }
  0x7d   : > { %v662_v6 = vld [vmem:[#allocation2 + $0x10] sm:$0xff]  ;;  %v2931_v7 = vpack.c.bf16 %v727_v4, %v725_v2  ;;  %v724_v9 = vld [vmem:[#allocation4] sm:$0xff]  ;;  %v665_v11 = vld [vmem:[#allocation2 + $0x28] sm:$0xff]  ;;  %s3473_s25 = smov (!%p631_p4, %s2784_s25), 1  ;;  %vm1493_vm2 = vcmask 523264   ;;  %s3442_s1 = sld [smem:[#allocation42_spill]] }
  0x7e   : > { %v2933_v8 = vpack.c.bf16 %v662_v6, %v660_v5  ;;  %v726_v10 = vld [vmem:[#allocation4 + $0x10] sm:$0xff]  ;;  %2087 = vmatprep.subr.bf16.mxu0 %v2929_v3  ;;  %v667_v13 = vld [vmem:[#allocation2 + $0x38] sm:$0xff]  ;;  %v729_v14 = vld [vmem:[#allocation4 + $0x28] sm:$0xff]  ;;  %s3049_s24 = sshll.u32 %s3473_s25, 3  ;;  %s2060_s30 = sshll.u32 %s3473_s25, 1  ;;  %vm1584_vm3 = vcmask 130048  }
  0x7f   : > { %v2936_v12 = vpack.c.bf16 %v726_v10, %v724_v9  ;;  %v731_v15 = vld [vmem:[#allocation4 + $0x38] sm:$0xff]  ;;  %2151 = vmatprep.subr.bf16.mxu1 %v2931_v7  ;;  %v2940_v16 = vpack.c.bf16 %v667_v13, %v665_v11  ;;  %v664_v18 = vld [vmem:[#allocation2 + $0x20] sm:$0xff]  ;;  %v666_v19 = vld [vmem:[#allocation2 + $0x30] sm:$0xff]  ;;  %s644_s16 = scalar_lea.vmem %s3362_s14, %s3049_s24  ;;  %s649_s10 = scalar_lea.vmem %s3363_s15, %s3049_s24  ;;  %vm1844_vm4 = vcmask 0  }
  0x80   : > { %2089 = vmatpush1.bf16.msra.mxu0 %v2933_v8  ;;  %v2942_v17 = vpack.c.bf16 %v731_v15, %v729_v14  ;;  %v728_v20 = vld [vmem:[#allocation4 + $0x20] sm:$0xff]  ;;  %v2945_v21 = vpack.c.bf16 %v666_v19, %v664_v18  ;;  %v730_v22 = vld [vmem:[#allocation4 + $0x30] sm:$0xff]  ;;  %v669_v23 = vld [vmem:[#allocation2 + $0x48] sm:$0xff]  ;;  %s3469_s0 = sld [smem:[#allocation43_spill]] }
  0x81   : > { %2153 = vmatpush1.bf16.msra.mxu1 %v2936_v12  ;;  %v671_v24 = vld [vmem:[#allocation2 + $0x58] sm:$0xff]  ;;  %2091 = vmatprep.subr.bf16.mxu0 %v2940_v16  ;;  %v2949_v25 = vpack.c.bf16 %v730_v22, %v728_v20  ;;  %v733_v27 = vld [vmem:[#allocation4 + $0x48] sm:$0xff]  ;;  %v668_v29 = vld [vmem:[#allocation2 + $0x40] sm:$0xff]  ;;  %s635_s22 = scalar_lea.vmem %s3428_s20, %s3049_s24  ;;  %s3470_s20 = sld [smem:[#allocation44_spill]] }
  0x82   : > { %2155 = vmatprep.subr.bf16.mxu1 %v2942_v17  ;;  %v2951_v26 = vpack.c.bf16 %v671_v24, %v669_v23  ;;  %v735_v28 = vld [vmem:[#allocation4 + $0x58] sm:$0xff]  ;;  %v670_v31 = vld [vmem:[#allocation2 + $0x50] sm:$0xff]  ;;  %v732_v32 = vld [vmem:[#allocation4 + $0x40] sm:$0xff]  ;;  %s639_s28 = scalar_lea.vmem %s3440_s23, %s2060_s30 }
  0x83   : > { %v2953_v30 = vpack.c.bf16 %v735_v28, %v733_v27  ;;  %v734_v33 = vld [vmem:[#allocation4 + $0x50] sm:$0xff]  ;;  %v2956_v34 = vpack.c.bf16 %v670_v31, %v668_v29  ;;  %v673_v35 = vld [vmem:[#allocation2 + $0x68] sm:$0xff]  ;;  %v675_v36 = vld [vmem:[#allocation2 + $0x78] sm:$0xff] }
  0x84   : > { %2093 = vmatpush1.bf16.msra.mxu0 %v2945_v21  ;;  %v737_v37 = vld [vmem:[#allocation4 + $0x68] sm:$0xff]  ;;  %v2960_v38 = vpack.c.bf16 %v734_v33, %v732_v32  ;;  %v2962_v39 = vpack.c.bf16 %v675_v36, %v673_v35  ;;  %v739_v40 = vld [vmem:[#allocation4 + $0x78] sm:$0xff]  ;;  %v672_v41 = vld [vmem:[#allocation2 + $0x60] sm:$0xff] }
  0x85   : > { %2157 = vmatpush1.bf16.msra.mxu1 %v2949_v25  ;;  %2095 = vmatprep.subr.bf16.mxu0 %v2951_v26  ;;  %v674_v42 = vld [vmem:[#allocation2 + $0x70] sm:$0xff]  ;;  %v2965_v43 = vpack.c.bf16 %v739_v40, %v737_v37  ;;  %v736_v44 = vld [vmem:[#allocation4 + $0x60] sm:$0xff]  ;;  %v677_v46 = vld [vmem:[#allocation2 + $0x88] sm:$0xff] }
  0x86   : > { %2159 = vmatprep.subr.bf16.mxu1 %v2953_v30  ;;  %v738_v45 = vld [vmem:[#allocation4 + $0x70] sm:$0xff]  ;;  %v679_v47 = vld [vmem:[#allocation2 + $0x98] sm:$0xff]  ;;  %v741_v48 = vld [vmem:[#allocation4 + $0x88] sm:$0xff]  ;;  %v2968_v50 = vpack.c.bf16 %v674_v42, %v672_v41  ;;  %s654_s26 = scalar_lea.vmem %s3469_s0, %s3049_s24 }
  0x87   : > { %3413 = vst [vmem:[#allocation13_spill] sm:$0xff] %v2965_v43  ;;  %v743_v49 = vld [vmem:[#allocation4 + $0x98] sm:$0xff]  ;;  %v2972_v51 = vpack.c.bf16 %v738_v45, %v736_v44  ;;  %v2974_v52 = vpack.c.bf16 %v679_v47, %v677_v46  ;;  %v676_v53 = vld [vmem:[#allocation2 + $0x80] sm:$0xff]  ;;  %v678_v54 = vld [vmem:[#allocation2 + $0x90] sm:$0xff] }
  0x88   : > { %2097 = vmatpush1.bf16.msra.mxu0 %v2956_v34  ;;  %v740_v55 = vld [vmem:[#allocation4 + $0x80] sm:$0xff]  ;;  %v2977_v56 = vpack.c.bf16 %v743_v49, %v741_v48  ;;  %v742_v57 = vld [vmem:[#allocation4 + $0x90] sm:$0xff]  ;;  %v681_v58 = vld [vmem:[#allocation2 + $0xa8] sm:$0xff]  ;;  %v2980_v62 = vpack.c.bf16 %v678_v54, %v676_v53 }
  0x89   : > { %2161 = vmatpush1.bf16.msra.mxu1 %v2960_v38  ;;  %2099 = vmatprep.subr.bf16.mxu0 %v2962_v39  ;;  %3414 = vst [vmem:[#allocation14_spill] sm:$0xff] %v2972_v51  ;;  %v683_v59 = vld [vmem:[#allocation2 + $0xb8] sm:$0xff]  ;;  %v745_v60 = vld [vmem:[#allocation4 + $0xa8] sm:$0xff]  ;;  %v2984_v63 = vpack.c.bf16 %v742_v57, %v740_v55  ;;  %v680_v1 = vld [vmem:[#allocation2 + $0xa0] sm:$0xff] }
  0x8a   : > { %2163 = vmatprep.subr.bf16.mxu1 %v2965_v43  ;;  %3415 = vst [vmem:[#allocation15_spill] sm:$0xff] %v2977_v56  ;;  %v747_v61 = vld [vmem:[#allocation4 + $0xb8] sm:$0xff]  ;;  %v2986_v0 = vpack.c.bf16 %v683_v59, %v681_v58  ;;  %v682_v2 = vld [vmem:[#allocation2 + $0xb0] sm:$0xff]  ;;  %v744_v4 = vld [vmem:[#allocation4 + $0xa0] sm:$0xff] }
  0x8b   : > { %3416 = vst [vmem:[#allocation16_spill] sm:$0xff] %v2984_v63  ;;  %v2989_v5 = vpack.c.bf16 %v747_v61, %v745_v60  ;;  %v746_v6 = vld [vmem:[#allocation4 + $0xb0] sm:$0xff]  ;;  %v685_v9 = vld [vmem:[#allocation2 + $0xc8] sm:$0xff]  ;;  %v687_v10 = vld [vmem:[#allocation2 + $0xd8] sm:$0xff]  ;;  %v2992_v14 = vpack.c.bf16 %v682_v2, %v680_v1 }
  0x8c   : > { %2101 = vmatpush1.bf16.msra.mxu0 %v2968_v50  ;;  %v749_v11 = vld [vmem:[#allocation4 + $0xc8] sm:$0xff]  ;;  %v751_v13 = vld [vmem:[#allocation4 + $0xd8] sm:$0xff]  ;;  %v2996_v15 = vpack.c.bf16 %v746_v6, %v744_v4  ;;  %v2998_v18 = vpack.c.bf16 %v687_v10, %v685_v9  ;;  %v684_v19 = vld [vmem:[#allocation2 + $0xc0] sm:$0xff] }
  0x8d   : > { %2165 = vmatpush1.bf16.msra.mxu1 %v2972_v51  ;;  %2103 = vmatprep.subr.bf16.mxu0 %v2974_v52  ;;  %3417 = vst [vmem:[#allocation17_spill] sm:$0xff] %v2989_v5  ;;  %v686_v20 = vld [vmem:[#allocation2 + $0xd0] sm:$0xff]  ;;  %v748_v22 = vld [vmem:[#allocation4 + $0xc0] sm:$0xff]  ;;  %v3001_v23 = vpack.c.bf16 %v751_v13, %v749_v11  ;;  %v689_v27 = vld [vmem:[#allocation2 + $0xe8] sm:$0xff] }
  0x8e   : > { %2167 = vmatprep.subr.bf16.mxu1 %v2977_v56  ;;  %3418 = vst [vmem:[#allocation18_spill] sm:$0xff] %v2996_v15  ;;  %v750_v24 = vld [vmem:[#allocation4 + $0xd0] sm:$0xff]  ;;  %v691_v28 = vld [vmem:[#allocation2 + $0xf8] sm:$0xff]  ;;  %v753_v29 = vld [vmem:[#allocation4 + $0xe8] sm:$0xff]  ;;  %v3004_v32 = vpack.c.bf16 %v686_v20, %v684_v19 }
  0x8f   : > { %3419 = vst [vmem:[#allocation19_spill] sm:$0xff] %v3001_v23  ;;  %v755_v31 = vld [vmem:[#allocation4 + $0xf8] sm:$0xff]  ;;  %v3008_v33 = vpack.c.bf16 %v750_v24, %v748_v22  ;;  %v3010_v35 = vpack.c.bf16 %v691_v28, %v689_v27  ;;  %v688_v36 = vld [vmem:[#allocation2 + $0xe0] sm:$0xff]  ;;  %v690_v37 = vld [vmem:[#allocation2 + $0xf0] sm:$0xff] }
  0x90   : > { %2105 = vmatpush1.bf16.msra.mxu0 %v2980_v62  ;;  %v752_v40 = vld [vmem:[#allocation4 + $0xe0] sm:$0xff]  ;;  %v3013_v41 = vpack.c.bf16 %v755_v31, %v753_v29  ;;  %v754_v42 = vld [vmem:[#allocation4 + $0xf0] sm:$0xff]  ;;  %v693_v44 = vld [vmem:[#allocation2 + $0x108] sm:$0xff]  ;;  %v3016_v48 = vpack.c.bf16 %v690_v37, %v688_v36 }
  0x91   : > { %2169 = vmatpush1.bf16.msra.mxu1 %v2984_v63  ;;  %2107 = vmatprep.subr.bf16.mxu0 %v2986_v0  ;;  %3420 = vst [vmem:[#allocation20_spill] sm:$0xff] %v3008_v33  ;;  %v695_v45 = vld [vmem:[#allocation2 + $0x118] sm:$0xff]  ;;  %v757_v46 = vld [vmem:[#allocation4 + $0x108] sm:$0xff]  ;;  %v3021_v49 = vpack.c.bf16 %v754_v42, %v752_v40  ;;  %v692_v54 = vld [vmem:[#allocation2 + $0x100] sm:$0xff] }
  0x92   : > { %2171 = vmatprep.subr.bf16.mxu1 %v2989_v5  ;;  %3421 = vst [vmem:[#allocation21_spill] sm:$0xff] %v3013_v41  ;;  %v759_v47 = vld [vmem:[#allocation4 + $0x118] sm:$0xff]  ;;  %v3023_v53 = vpack.c.bf16 %v695_v45, %v693_v44  ;;  %v694_v55 = vld [vmem:[#allocation2 + $0x110] sm:$0xff]  ;;  %v756_v57 = vld [vmem:[#allocation4 + $0x100] sm:$0xff] }
  0x93   : > { %3422 = vst [vmem:[#allocation22_spill] sm:$0xff] %v3021_v49  ;;  %v3026_v58 = vpack.c.bf16 %v759_v47, %v757_v46  ;;  %v758_v59 = vld [vmem:[#allocation4 + $0x110] sm:$0xff]  ;;  %v697_v60 = vld [vmem:[#allocation2 + $0x128] sm:$0xff]  ;;  %v699_v61 = vld [vmem:[#allocation2 + $0x138] sm:$0xff]  ;;  %v3029_v4 = vpack.c.bf16 %v694_v55, %v692_v54 }
  0x94   : > { %2109 = vmatpush1.bf16.msra.mxu0 %v2992_v14  ;;  %v761_v1 = vld [vmem:[#allocation4 + $0x128] sm:$0xff]  ;;  %v763_v2 = vld [vmem:[#allocation4 + $0x138] sm:$0xff]  ;;  %v3038_v6 = vpack.c.bf16 %v758_v59, %v756_v57  ;;  %v3040_v9 = vpack.c.bf16 %v699_v61, %v697_v60  ;;  %v696_v10 = vld [vmem:[#allocation2 + $0x120] sm:$0xff] }
  0x95   : > { %2173 = vmatpush1.bf16.msra.mxu1 %v2996_v15  ;;  %2111 = vmatprep.subr.bf16.mxu0 %v2998_v18  ;;  %3423 = vst [vmem:[#allocation23_spill] sm:$0xff] %v3026_v58  ;;  %v698_v11 = vld [vmem:[#allocation2 + $0x130] sm:$0xff]  ;;  %v760_v13 = vld [vmem:[#allocation4 + $0x120] sm:$0xff]  ;;  %v3043_v19 = vpack.c.bf16 %v763_v2, %v761_v1  ;;  %v701_v22 = vld [vmem:[#allocation2 + $0x148] sm:$0xff] }
  0x96   : > { %2175 = vmatprep.subr.bf16.mxu1 %v3001_v23  ;;  %3424 = vst [vmem:[#allocation24_spill] sm:$0xff] %v3038_v6  ;;  %v762_v20 = vld [vmem:[#allocation4 + $0x130] sm:$0xff]  ;;  %v703_v24 = vld [vmem:[#allocation2 + $0x158] sm:$0xff]  ;;  %v765_v27 = vld [vmem:[#allocation4 + $0x148] sm:$0xff]  ;;  %v3046_v29 = vpack.c.bf16 %v698_v11, %v696_v10 }
  0x97   : > { %3425 = vst [vmem:[#allocation25_spill] sm:$0xff] %v3043_v19  ;;  %v767_v28 = vld [vmem:[#allocation4 + $0x158] sm:$0xff]  ;;  %v3053_v31 = vpack.c.bf16 %v762_v20, %v760_v13  ;;  %v3055_v36 = vpack.c.bf16 %v703_v24, %v701_v22  ;;  %v700_v37 = vld [vmem:[#allocation2 + $0x140] sm:$0xff]  ;;  %v702_v40 = vld [vmem:[#allocation2 + $0x150] sm:$0xff] }
  0x98   : > { %2113 = vmatpush1.bf16.msra.mxu0 %v3004_v32  ;;  %v764_v42 = vld [vmem:[#allocation4 + $0x140] sm:$0xff]  ;;  %v3058_v44 = vpack.c.bf16 %v767_v28, %v765_v27  ;;  %v766_v45 = vld [vmem:[#allocation4 + $0x150] sm:$0xff]  ;;  %v705_v46 = vld [vmem:[#allocation2 + $0x168] sm:$0xff]  ;;  %v3065_v57 = vpack.c.bf16 %v702_v40, %v700_v37 }
  0x99   : > { %2177 = vmatpush1.bf16.msra.mxu1 %v3008_v33  ;;  %2115 = vmatprep.subr.bf16.mxu0 %v3010_v35  ;;  %3426 = vst [vmem:[#allocation26_spill] sm:$0xff] %v3053_v31  ;;  %v707_v47 = vld [vmem:[#allocation2 + $0x178] sm:$0xff]  ;;  %v769_v54 = vld [vmem:[#allocation4 + $0x168] sm:$0xff]  ;;  %v704_v59 = vld [vmem:[#allocation2 + $0x160] sm:$0xff]  ;;  %v3069_v60 = vpack.c.bf16 %v766_v45, %v764_v42 }
  0x9a   : > { %2179 = vmatprep.subr.bf16.mxu1 %v3013_v41  ;;  %3427 = vst [vmem:[#allocation27_spill] sm:$0xff] %v3058_v44  ;;  %v771_v55 = vld [vmem:[#allocation4 + $0x178] sm:$0xff]  ;;  %v3071_v61 = vpack.c.bf16 %v707_v47, %v705_v46  ;;  %v706_v1 = vld [vmem:[#allocation2 + $0x170] sm:$0xff]  ;;  %v768_v2 = vld [vmem:[#allocation4 + $0x160] sm:$0xff] }
  0x9b   : > { %3429 = vst [vmem:[#allocation28_spill] sm:$0xff] %v3069_v60  ;;  %v770_v10 = vld [vmem:[#allocation4 + $0x170] sm:$0xff]  ;;  %v3074_v11 = vpack.c.bf16 %v771_v55, %v769_v54  ;;  %v709_v13 = vld [vmem:[#allocation2 + $0x188] sm:$0xff]  ;;  %v711_v20 = vld [vmem:[#allocation2 + $0x198] sm:$0xff]  ;;  %v3081_v37 = vpack.c.bf16 %v706_v1, %v704_v59 }
  0x9c   : > { %2117 = vmatpush1.bf16.msra.mxu0 %v3016_v48  ;;  %v3076_v22 = vld [vmem:[%s635_s22] sm:$0x77]  ;;  %v773_v24 = vld [vmem:[#allocation4 + $0x188] sm:$0xff]  ;;  %v775_v27 = vld [vmem:[#allocation4 + $0x198] sm:$0xff]  ;;  %v3085_v40 = vpack.c.bf16 %v770_v10, %v768_v2  ;;  %v3087_v42 = vpack.c.bf16 %v711_v20, %v709_v13  ;;  %s657_s22 = scalar_lea.vmem %s3470_s20, %s3473_s25 }
  0x9d   : > { %2181 = vmatpush1.bf16.msra.mxu1 %v3021_v49  ;;  %2119 = vmatprep.subr.bf16.mxu0 %v3023_v53  ;;  %3430 = vst [vmem:[#allocation29_spill] sm:$0xff] %v3074_v11  ;;  %v789_v28 = vcombine.high %v3076_v22, %v3076_v22  ;;  %v708_v45 = vld [vmem:[#allocation2 + $0x180] sm:$0xff]  ;;  %v710_v46 = vld [vmem:[#allocation2 + $0x190] sm:$0xff]  ;;  %v3090_v54 = vpack.c.bf16 %v775_v27, %v773_v24  ;;  %v777_v59 = vld [vmem:[#allocation4 + $0x1a8] sm:$0xff] }
  0x9e   : > { %2183 = vmatprep.subr.bf16.mxu1 %v3026_v58  ;;  %3431 = vst [vmem:[#allocation30_spill] sm:$0xff] %v3085_v40  ;;  %v772_v47 = vld [vmem:[#allocation4 + $0x180] sm:$0xff]  ;;  %v774_v55 = vld [vmem:[#allocation4 + $0x190] sm:$0xff]  ;;  %v779_v1 = vld [vmem:[#allocation4 + $0x1b8] sm:$0xff]  ;;  %v3093_v2 = vpack.c.bf16 %v710_v46, %v708_v45 }
  0x9f   : > { %3432 = vst [vmem:[#allocation31_spill] sm:$0xff] %v3090_v54  ;;  %855 = vmatprep.mubr.f32.mxu0 %v789_v28  ;;  %939 = vmatprep.mubr.f32.mxu1 %v789_v28  ;;  %v3097_v10 = vpack.c.bf16 %v774_v55, %v772_v47  ;;  %v712_v20 = vld [vmem:[#allocation2 + $0x1a0] sm:$0xff]  ;;  %v714_v24 = vld [vmem:[#allocation2 + $0x1b0] sm:$0xff]  ;;  %v781_v45 = vld [vmem:[#allocation4 + $0x1c8] sm:$0xff] }
  0xa0   : > { %2121 = vmatpush1.bf16.msra.mxu0 %v3029_v4  ;;  %v776_v27 = vld [vmem:[#allocation4 + $0x1a0] sm:$0xff]  ;;  %v778_v28 = vld [vmem:[#allocation4 + $0x1b0] sm:$0xff]  ;;  %v783_v46 = vld [vmem:[#allocation4 + $0x1d8] sm:$0xff] }
  0xa1   : > { %2185 = vmatpush1.bf16.msra.mxu1 %v3038_v6  ;;  %2123 = vmatprep.subr.bf16.mxu0 %v3040_v9  ;;  %3433 = vst [vmem:[#allocation32_spill] sm:$0xff] %v3097_v10  ;;  %v716_v47 = vld [vmem:[#allocation2 + $0x1c0] sm:$0xff]  ;;  %v718_v55 = vld [vmem:[#allocation2 + $0x1d0] sm:$0xff]  ;;  %v721_v6 = vld [vmem:[#allocation2 + $0x1e8] sm:$0xff] }
  0xa2   : > { %2187 = vmatprep.subr.bf16.mxu1 %v3043_v19  ;;  %v719_v19 = vld [vmem:[#allocation2 + $0x1d8] sm:$0xff]  ;;  %v949_v49 = vld [vmem:[#allocation6 + $0x8] sm:$0xff] }
  0xa3   : > { %v723_v58 = vld [vmem:[#allocation2 + $0x1f8] sm:$0xff]  ;;  %v953_v33 = vld [vmem:[#allocation6 + $0x28] sm:$0xff] }
  0xa4   : > { %2125 = vmatpush1.bf16.msra.mxu0 %v3046_v29  ;;  %v951_v41 = vld [vmem:[#allocation6 + $0x18] sm:$0xff]  ;;  %v1088_v15 = vld [vmem:[#allocation7 + $0x28] sm:$0xff] }
  0xa5   : > { %2189 = vmatpush1.bf16.msra.mxu1 %v3053_v31  ;;  %2127 = vmatprep.subr.bf16.mxu0 %v3055_v36  ;;  %v715_v31 = vld [vmem:[#allocation2 + $0x1b8] sm:$0xff]  ;;  %v1092_v63 = vld [vmem:[#allocation7 + $0x48] sm:$0xff] }
  0xa6   : > { %2191 = vmatprep.subr.bf16.mxu1 %v3058_v44  ;;  %v713_v44 = vld [vmem:[#allocation2 + $0x1a8] sm:$0xff]  ;;  %v955_v23 = vld [vmem:[#allocation6 + $0x38] sm:$0xff] }
  0xa7   : > { %v3099_v13 = vpack.c.bf16 %v715_v31, %v713_v44  ;;  %v3109_v31 = vpack.c.bf16 %v778_v28, %v776_v27  ;;  %v720_v27 = vld [vmem:[#allocation2 + $0x1e0] sm:$0xff]  ;;  %v722_v28 = vld [vmem:[#allocation2 + $0x1f0] sm:$0xff]  ;;  %v1090_v5 = vld [vmem:[#allocation7 + $0x38] sm:$0xff] }
  0xa8   : > { %2129 = vmatpush1.bf16.msra.mxu0 %v3065_v57  ;;  %v1094_v56 = vld [vmem:[#allocation7 + $0x58] sm:$0xff] }
  0xa9   : > { %2193 = vmatpush1.bf16.msra.mxu1 %v3069_v60  ;;  %2131 = vmatprep.subr.bf16.mxu0 %v3071_v61  ;;  %v717_v60 = vld [vmem:[#allocation2 + $0x1c8] sm:$0xff]  ;;  %3435 = vst [vmem:[#allocation34_spill] sm:$0xff] %v3109_v31  ;;  %v1098_v51 = vld [vmem:[#allocation7 + $0x78] sm:$0xff] }
  0xaa   : > { %2195 = vmatprep.subr.bf16.mxu1 %v3074_v11  ;;  %v3102_v11 = vpack.c.bf16 %v779_v1, %v777_v59  ;;  %v3111_v44 = vpack.c.bf16 %v719_v19, %v717_v60  ;;  %v780_v59 = vld [vmem:[#allocation4 + $0x1c0] sm:$0xff]  ;;  %v3114_v1 = vpack.c.bf16 %v783_v46, %v781_v45  ;;  %v3123_v60 = vpack.c.bf16 %v723_v58, %v721_v6 }
  0xab   : > { %v784_v45 = vld [vmem:[#allocation4 + $0x1e0] sm:$0xff]  ;;  %v2214_v6 = vpack.c.bf16 %v951_v41, %v949_v49  ;;  %v954_v49 = vld [vmem:[#allocation6 + $0x30] sm:$0xff] }
  0xac   : > { %2133 = vmatpush1.bf16.msra.mxu0 %v3081_v37  ;;  %3434 = vst [vmem:[#allocation33_spill] sm:$0xff] %v3102_v11  ;;  %3436 = vst [vmem:[#allocation35_spill] sm:$0xff] %v3114_v1  ;;  %v952_v41 = vld [vmem:[#allocation6 + $0x20] sm:$0xff] }
  0xad   : > { %2197 = vmatpush1.bf16.msra.mxu1 %v3085_v40  ;;  %2135 = vmatprep.subr.bf16.mxu0 %v3087_v42  ;;  %v3105_v40 = vpack.c.bf16 %v714_v24, %v712_v20  ;;  %v785_v20 = vld [vmem:[#allocation4 + $0x1e8] sm:$0xff]  ;;  %v787_v24 = vld [vmem:[#allocation4 + $0x1f8] sm:$0xff] }
  0xae   : > { %2199 = vmatprep.subr.bf16.mxu1 %v3090_v54  ;;  %v782_v54 = vld [vmem:[#allocation4 + $0x1d0] sm:$0xff]  ;;  %v3126_v46 = vpack.c.bf16 %v787_v24, %v785_v20  ;;  %v1083_v20 = vld [vmem:[#allocation7] sm:$0xff] }
  0xaf   : > { %v3121_v19 = vpack.c.bf16 %v782_v54, %v780_v59  ;;  %v948_v54 = vld [vmem:[#allocation6] sm:$0xff]  ;;  %v950_v59 = vld [vmem:[#allocation6 + $0x10] sm:$0xff] }
  0xb0   : > { %2137 = vmatpush1.bf16.msra.mxu0 %v3093_v2  ;;  %3438 = vst [vmem:[#allocation37_spill] sm:$0xff] %v3126_v46 }
  0xb1   : > { %2201 = vmatpush1.bf16.msra.mxu1 %v3097_v10  ;;  %2139 = vmatprep.subr.bf16.mxu0 %v3099_v13  ;;  %v3117_v10 = vpack.c.bf16 %v718_v55, %v716_v47  ;;  %3437 = vst [vmem:[#allocation36_spill] sm:$0xff] %v3121_v19  ;;  %v1084_v47 = vld [vmem:[#allocation7 + $0x8] sm:$0xff]  ;;  %v1086_v55 = vld [vmem:[#allocation7 + $0x18] sm:$0xff] }
  0xb2   : > { %2203 = vmatprep.subr.bf16.mxu1 %v3102_v11  ;;  %v786_v11 = vld [vmem:[#allocation4 + $0x1f0] sm:$0xff]  ;;  %v2278_v24 = vpack.c.bf16 %v1086_v55, %v1084_v47  ;;  %v957_v47 = vld [vmem:[#allocation6 + $0x48] sm:$0xff]  ;;  %v959_v55 = vld [vmem:[#allocation6 + $0x58] sm:$0xff] }
  0xb3   : > { %v3133_v58 = vpack.c.bf16 %v786_v11, %v784_v45  ;;  %v1087_v45 = vld [vmem:[#allocation7 + $0x20] sm:$0xff] }
  0xb4   : > { %2141 = vmatpush1.bf16.msra.mxu0 %v3105_v40 }
  0xb5   : > { %2205 = vmatpush1.bf16.msra.mxu1 %v3109_v31  ;;  %2143 = vmatprep.subr.bf16.mxu0 %v3111_v44  ;;  %v3129_v31 = vpack.c.bf16 %v722_v28, %v720_v27  ;;  %3439 = vst [vmem:[#allocation38_spill] sm:$0xff] %v3133_v58  ;;  %v2216_v27 = vpack.c.bf16 %v950_v59, %v948_v54  ;;  %v1091_v59 = vld [vmem:[#allocation7 + $0x40] sm:$0xff] }
  0xb6   : > { %2207 = vmatprep.subr.bf16.mxu1 %v3114_v1  ;;  %v1085_v1 = vld [vmem:[#allocation7 + $0x10] sm:$0xff]  ;;  %v2218_v28 = vpack.c.bf16 %v955_v23, %v953_v33  ;;  %v2220_v54 = vpack.c.bf16 %v954_v49, %v952_v41  ;;  %v2222_v23 = vpack.c.bf16 %v959_v55, %v957_v47  ;;  %v956_v33 = vld [vmem:[#allocation6 + $0x40] sm:$0xff]  ;;  %v965_v47 = vld [vmem:[#allocation6 + $0x88] sm:$0xff] }
  0xb7   : > { %v2280_v11 = vpack.c.bf16 %v1085_v1, %v1083_v20  ;;  %v961_v20 = vld [vmem:[#allocation6 + $0x68] sm:$0xff] }
  0xb8   : > { %2145 = vmatpush1.bf16.msra.mxu0 %v3117_v10 }
  0xb9   : > { %2209 = vmatpush1.bf16.msra.mxu1 %v3121_v19  ;;  %2147 = vmatprep.subr.bf16.mxu0 %v3123_v60  ;;  %v2282_v19 = vpack.c.bf16 %v1090_v5, %v1088_v15  ;;  %v2286_v5 = vpack.c.bf16 %v1094_v56, %v1092_v63  ;;  %v1093_v15 = vld [vmem:[#allocation7 + $0x50] sm:$0xff]  ;;  %v1100_v56 = vld [vmem:[#allocation7 + $0x88] sm:$0xff]  ;;  %v1102_v63 = vld [vmem:[#allocation7 + $0x98] sm:$0xff] }
  0xba   : > { %2211 = vmatprep.subr.bf16.mxu1 %v3126_v46  ;;  %v1089_v46 = vld [vmem:[#allocation7 + $0x30] sm:$0xff] }
  0xbb   : > { %v2284_v1 = vpack.c.bf16 %v1089_v46, %v1087_v45  ;;  %v1095_v46 = vld [vmem:[#allocation7 + $0x60] sm:$0xff]  ;;  %v1097_v45 = vld [vmem:[#allocation7 + $0x70] sm:$0xff] }
  0xbc   : > { %2149 = vmatpush1.bf16.msra.mxu0 %v3129_v31 }
  0xbd   : > { %2213 = vmatpush1.bf16.msra.mxu1 %v3133_v58  ;;  %2215 = vmatprep.subr.bf16.mxu0 %v2214_v6  ;;  %v958_v6 = vld [vmem:[#allocation6 + $0x50] sm:$0xff]  ;;  %v1096_v58 = vld [vmem:[#allocation7 + $0x68] sm:$0xff] }
  0xbe   : > { %2279 = vmatprep.subr.bf16.mxu1 %v2278_v24  ;;  %v963_v24 = vld [vmem:[#allocation6 + $0x78] sm:$0xff]  ;;  %v2224_v43 = vpack.c.bf16 %v958_v6, %v956_v33  ;;  %v2290_v49 = vpack.c.bf16 %v1098_v51, %v1096_v58  ;;  %v1099_v6 = vld [vmem:[#allocation7 + $0x80] sm:$0xff]  ;;  %v1104_v51 = vld [vmem:[#allocation7 + $0xa8] sm:$0xff] }
  0xbf   : > { %856 = vmatmul.mubr.f32.vlgmr.msra.gmra.mrb[0].mxu0 %v3076_v22  ;;  %v2226_v41 = vpack.c.bf16 %v963_v24, %v961_v20  ;;  %v969_v20 = vld [vmem:[#allocation6 + $0xa8] sm:$0xff]  ;;  %v1106_v58 = vld [vmem:[#allocation7 + $0xb8] sm:$0xff] }
  0xc0   : > { %940 = vmatmul.mubr.f32.vlgmr.msra.gmra.mrb[0].mxu1 %v3076_v22  ;;  %2217 = vmatpush1.bf16.msra.mxu0 %v2216_v27  ;;  %v2288_v27 = vpack.c.bf16 %v1093_v15, %v1091_v59  ;;  %v2294_v59 = vpack.c.bf16 %v1102_v63, %v1100_v56  ;;  %v1101_v15 = vld [vmem:[#allocation7 + $0x90] sm:$0xff]  ;;  %v1110_v56 = vld [vmem:[#allocation7 + $0xd8] sm:$0xff] }
  0xc1   : > { %2281 = vmatpush1.bf16.msra.mxu1 %v2280_v11  ;;  %2219 = vmatprep.subr.bf16.mxu0 %v2218_v28  ;;  %v960_v11 = vld [vmem:[#allocation6 + $0x60] sm:$0xff]  ;;  %v962_v28 = vld [vmem:[#allocation6 + $0x70] sm:$0xff] }
  0xc2   : > { %2283 = vmatprep.subr.bf16.mxu1 %v2282_v19  ;;  %v967_v19 = vld [vmem:[#allocation6 + $0x98] sm:$0xff]  ;;  %v2228_v55 = vpack.c.bf16 %v962_v28, %v960_v11  ;;  %v1103_v28 = vld [vmem:[#allocation7 + $0xa0] sm:$0xff] }
  0xc3   : > { %v2230_v33 = vpack.c.bf16 %v967_v19, %v965_v47  ;;  %v973_v47 = vld [vmem:[#allocation6 + $0xc8] sm:$0xff] }
  0xc4   : > { %2221 = vmatpush1.bf16.msra.mxu0 %v2220_v54  ;;  %v2292_v54 = vpack.c.bf16 %v1097_v45, %v1095_v46  ;;  %v2298_v46 = vpack.c.bf16 %v1106_v58, %v1104_v51  ;;  %v1105_v45 = vld [vmem:[#allocation7 + $0xb0] sm:$0xff]  ;;  %v1108_v19 = vld [vmem:[#allocation7 + $0xc8] sm:$0xff]  ;;  %v1114_v51 = vld [vmem:[#allocation7 + $0xf8] sm:$0xff] }
  0xc5   : > { %2285 = vmatpush1.bf16.msra.mxu1 %v2284_v1  ;;  %2223 = vmatprep.subr.bf16.mxu0 %v2222_v23  ;;  %v964_v1 = vld [vmem:[#allocation6 + $0x80] sm:$0xff]  ;;  %v966_v23 = vld [vmem:[#allocation6 + $0x90] sm:$0xff] }
  0xc6   : > { %2287 = vmatprep.subr.bf16.mxu1 %v2286_v5  ;;  %v971_v5 = vld [vmem:[#allocation6 + $0xb8] sm:$0xff]  ;;  %v2232_v24 = vpack.c.bf16 %v966_v23, %v964_v1  ;;  %v1107_v23 = vld [vmem:[#allocation7 + $0xc0] sm:$0xff] }
  0xc7   : > { %v2234_v11 = vpack.c.bf16 %v971_v5, %v969_v20  ;;  %v977_v20 = vld [vmem:[#allocation6 + $0xe8] sm:$0xff] }
  0xc8   : > { %2225 = vmatpush1.bf16.msra.mxu0 %v2224_v43  ;;  %v2296_v43 = vpack.c.bf16 %v1101_v15, %v1099_v6  ;;  %v2302_v6 = vpack.c.bf16 %v1110_v56, %v1108_v19  ;;  %v1109_v15 = vld [vmem:[#allocation7 + $0xd0] sm:$0xff]  ;;  %v1112_v5 = vld [vmem:[#allocation7 + $0xe8] sm:$0xff]  ;;  %v1118_v19 = vld [vmem:[#allocation7 + $0x118] sm:$0xff] }
  0xc9   : > { %2289 = vmatpush1.bf16.msra.mxu1 %v2288_v27  ;;  %2227 = vmatprep.subr.bf16.mxu0 %v2226_v41  ;;  %v968_v27 = vld [vmem:[#allocation6 + $0xa0] sm:$0xff]  ;;  %v970_v41 = vld [vmem:[#allocation6 + $0xb0] sm:$0xff] }
  0xca   : > { %2291 = vmatprep.subr.bf16.mxu1 %v2290_v49  ;;  %v975_v49 = vld [vmem:[#allocation6 + $0xd8] sm:$0xff]  ;;  %v2236_v63 = vpack.c.bf16 %v970_v41, %v968_v27  ;;  %v1111_v41 = vld [vmem:[#allocation7 + $0xe0] sm:$0xff] }
  0xcb   : > { %v2238_v1 = vpack.c.bf16 %v975_v49, %v973_v47  ;;  %v981_v47 = vld [vmem:[#allocation6 + $0x108] sm:$0xff] }
  0xcc   : > { %2229 = vmatpush1.bf16.msra.mxu0 %v2228_v55  ;;  %v2300_v55 = vpack.c.bf16 %v1105_v45, %v1103_v28  ;;  %v2306_v28 = vpack.c.bf16 %v1114_v51, %v1112_v5  ;;  %v1113_v45 = vld [vmem:[#allocation7 + $0xf0] sm:$0xff]  ;;  %v1116_v49 = vld [vmem:[#allocation7 + $0x108] sm:$0xff]  ;;  %v1122_v5 = vld [vmem:[#allocation7 + $0x138] sm:$0xff] }
  0xcd   : > { %2293 = vmatpush1.bf16.msra.mxu1 %v2292_v54  ;;  %2231 = vmatprep.subr.bf16.mxu0 %v2230_v33  ;;  %v972_v54 = vld [vmem:[#allocation6 + $0xc0] sm:$0xff]  ;;  %v974_v33 = vld [vmem:[#allocation6 + $0xd0] sm:$0xff] }
  0xce   : > { %2295 = vmatprep.subr.bf16.mxu1 %v2294_v59  ;;  %v979_v59 = vld [vmem:[#allocation6 + $0xf8] sm:$0xff]  ;;  %v2240_v58 = vpack.c.bf16 %v974_v33, %v972_v54  ;;  %v1115_v33 = vld [vmem:[#allocation7 + $0x100] sm:$0xff] }
  0xcf   : > { %v2242_v27 = vpack.c.bf16 %v979_v59, %v977_v20  ;;  %v985_v20 = vld [vmem:[#allocation6 + $0x128] sm:$0xff] }
  0xd0   : > { %2233 = vmatpush1.bf16.msra.mxu0 %v2232_v24  ;;  %v2304_v24 = vpack.c.bf16 %v1109_v15, %v1107_v23  ;;  %v2310_v23 = vpack.c.bf16 %v1118_v19, %v1116_v49  ;;  %v1117_v15 = vld [vmem:[#allocation7 + $0x110] sm:$0xff]  ;;  %v1120_v59 = vld [vmem:[#allocation7 + $0x128] sm:$0xff]  ;;  %v1126_v49 = vld [vmem:[#allocation7 + $0x158] sm:$0xff] }
  0xd1   : > { %2297 = vmatpush1.bf16.msra.mxu1 %v2296_v43  ;;  %2235 = vmatprep.subr.bf16.mxu0 %v2234_v11  ;;  %v976_v43 = vld [vmem:[#allocation6 + $0xe0] sm:$0xff]  ;;  %v978_v11 = vld [vmem:[#allocation6 + $0xf0] sm:$0xff] }
  0xd2   : > { %2299 = vmatprep.subr.bf16.mxu1 %v2298_v46  ;;  %v983_v46 = vld [vmem:[#allocation6 + $0x118] sm:$0xff]  ;;  %v2244_v56 = vpack.c.bf16 %v978_v11, %v976_v43  ;;  %v1119_v11 = vld [vmem:[#allocation7 + $0x120] sm:$0xff] }
  0xd3   : > { %v2246_v54 = vpack.c.bf16 %v983_v46, %v981_v47  ;;  %v989_v47 = vld [vmem:[#allocation6 + $0x148] sm:$0xff] }
  0xd4   : > { %2237 = vmatpush1.bf16.msra.mxu0 %v2236_v63  ;;  %v2308_v63 = vpack.c.bf16 %v1113_v45, %v1111_v41  ;;  %v2314_v41 = vpack.c.bf16 %v1122_v5, %v1120_v59  ;;  %v1121_v45 = vld [vmem:[#allocation7 + $0x130] sm:$0xff]  ;;  %v1124_v46 = vld [vmem:[#allocation7 + $0x148] sm:$0xff]  ;;  %v1130_v59 = vld [vmem:[#allocation7 + $0x178] sm:$0xff] }
  0xd5   : > { %2301 = vmatpush1.bf16.msra.mxu1 %v2300_v55  ;;  %2239 = vmatprep.subr.bf16.mxu0 %v2238_v1  ;;  %v980_v55 = vld [vmem:[#allocation6 + $0x100] sm:$0xff]  ;;  %v982_v1 = vld [vmem:[#allocation6 + $0x110] sm:$0xff] }
  0xd6   : > { %2303 = vmatprep.subr.bf16.mxu1 %v2302_v6  ;;  %v987_v6 = vld [vmem:[#allocation6 + $0x138] sm:$0xff]  ;;  %v2248_v51 = vpack.c.bf16 %v982_v1, %v980_v55  ;;  %v1123_v1 = vld [vmem:[#allocation7 + $0x140] sm:$0xff] }
  0xd7   : > { %v2250_v43 = vpack.c.bf16 %v987_v6, %v985_v20  ;;  %v993_v20 = vld [vmem:[#allocation6 + $0x168] sm:$0xff] }
  0xd8   : > { %2241 = vmatpush1.bf16.msra.mxu0 %v2240_v58  ;;  %v2312_v58 = vpack.c.bf16 %v1117_v15, %v1115_v33  ;;  %v2318_v33 = vpack.c.bf16 %v1126_v49, %v1124_v46  ;;  %v1125_v15 = vld [vmem:[#allocation7 + $0x150] sm:$0xff]  ;;  %v1128_v6 = vld [vmem:[#allocation7 + $0x168] sm:$0xff]  ;;  %v1134_v46 = vld [vmem:[#allocation7 + $0x198] sm:$0xff] }
  0xd9   : > { %2305 = vmatpush1.bf16.msra.mxu1 %v2304_v24  ;;  %2243 = vmatprep.subr.bf16.mxu0 %v2242_v27  ;;  %v984_v24 = vld [vmem:[#allocation6 + $0x120] sm:$0xff]  ;;  %v986_v27 = vld [vmem:[#allocation6 + $0x130] sm:$0xff] }
  0xda   : > { %2307 = vmatprep.subr.bf16.mxu1 %v2306_v28  ;;  %v991_v28 = vld [vmem:[#allocation6 + $0x158] sm:$0xff]  ;;  %v2252_v19 = vpack.c.bf16 %v986_v27, %v984_v24  ;;  %v1127_v27 = vld [vmem:[#allocation7 + $0x160] sm:$0xff] }
  0xdb   : > { %v2254_v55 = vpack.c.bf16 %v991_v28, %v989_v47  ;;  %v997_v47 = vld [vmem:[#allocation6 + $0x188] sm:$0xff] }
  0xdc   : > { %2245 = vmatpush1.bf16.msra.mxu0 %v2244_v56  ;;  %v2316_v56 = vpack.c.bf16 %v1121_v45, %v1119_v11  ;;  %v2322_v11 = vpack.c.bf16 %v1130_v59, %v1128_v6  ;;  %v1129_v45 = vld [vmem:[#allocation7 + $0x170] sm:$0xff]  ;;  %v1132_v28 = vld [vmem:[#allocation7 + $0x188] sm:$0xff]  ;;  %v1138_v6 = vld [vmem:[#allocation7 + $0x1b8] sm:$0xff] }
  0xdd   : > { %2309 = vmatpush1.bf16.msra.mxu1 %v2308_v63  ;;  %2247 = vmatprep.subr.bf16.mxu0 %v2246_v54  ;;  %v988_v63 = vld [vmem:[#allocation6 + $0x140] sm:$0xff]  ;;  %v990_v54 = vld [vmem:[#allocation6 + $0x150] sm:$0xff] }
  0xde   : > { %2311 = vmatprep.subr.bf16.mxu1 %v2310_v23  ;;  %v995_v23 = vld [vmem:[#allocation6 + $0x178] sm:$0xff]  ;;  %v2256_v5 = vpack.c.bf16 %v990_v54, %v988_v63  ;;  %v1131_v54 = vld [vmem:[#allocation7 + $0x180] sm:$0xff] }
  0xdf   : > { %v2258_v24 = vpack.c.bf16 %v995_v23, %v993_v20  ;;  %v1001_v20 = vld [vmem:[#allocation6 + $0x1a8] sm:$0xff] }
  0xe0   : > { %2249 = vmatpush1.bf16.msra.mxu0 %v2248_v51  ;;  %v2320_v51 = vpack.c.bf16 %v1125_v15, %v1123_v1  ;;  %v2326_v1 = vpack.c.bf16 %v1134_v46, %v1132_v28  ;;  %v1133_v15 = vld [vmem:[#allocation7 + $0x190] sm:$0xff]  ;;  %v1136_v23 = vld [vmem:[#allocation7 + $0x1a8] sm:$0xff]  ;;  %v1142_v28 = vld [vmem:[#allocation7 + $0x1d8] sm:$0xff] }
  0xe1   : > { %2313 = vmatpush1.bf16.msra.mxu1 %v2312_v58  ;;  %2251 = vmatprep.subr.bf16.mxu0 %v2250_v43  ;;  %v992_v58 = vld [vmem:[#allocation6 + $0x160] sm:$0xff]  ;;  %v994_v43 = vld [vmem:[#allocation6 + $0x170] sm:$0xff] }
  0xe2   : > { %2315 = vmatprep.subr.bf16.mxu1 %v2314_v41  ;;  %v999_v41 = vld [vmem:[#allocation6 + $0x198] sm:$0xff]  ;;  %v2260_v49 = vpack.c.bf16 %v994_v43, %v992_v58  ;;  %v1135_v43 = vld [vmem:[#allocation7 + $0x1a0] sm:$0xff] }
  0xe3   : > { %v2262_v63 = vpack.c.bf16 %v999_v41, %v997_v47  ;;  %v1005_v47 = vld [vmem:[#allocation6 + $0x1c8] sm:$0xff] }
  0xe4   : > { %2253 = vmatpush1.bf16.msra.mxu0 %v2252_v19  ;;  %v2324_v19 = vpack.c.bf16 %v1129_v45, %v1127_v27  ;;  %v2330_v27 = vpack.c.bf16 %v1138_v6, %v1136_v23  ;;  %v1137_v45 = vld [vmem:[#allocation7 + $0x1b0] sm:$0xff]  ;;  %v1140_v41 = vld [vmem:[#allocation7 + $0x1c8] sm:$0xff]  ;;  %v1011_v23 = vld [vmem:[#allocation6 + $0x1f8] sm:$0xff] }
  0xe5   : > { %2317 = vmatpush1.bf16.msra.mxu1 %v2316_v56  ;;  %2255 = vmatprep.subr.bf16.mxu0 %v2254_v55  ;;  %v996_v56 = vld [vmem:[#allocation6 + $0x180] sm:$0xff]  ;;  %v998_v55 = vld [vmem:[#allocation6 + $0x190] sm:$0xff]  ;;  %v1144_v6 = vld [vmem:[#allocation7 + $0x1e8] sm:$0xff] }
  0xe6   : > { %2319 = vmatprep.subr.bf16.mxu1 %v2318_v33  ;;  %v1003_v33 = vld [vmem:[#allocation6 + $0x1b8] sm:$0xff]  ;;  %v2264_v59 = vpack.c.bf16 %v998_v55, %v996_v56  ;;  %v2334_v55 = vpack.c.bf16 %v1142_v28, %v1140_v41  ;;  %v2685_v41 = vmov 0   ;;  %v1225_v28 = vld [vmem:[%s3351_s3] sm:$0x7] }
  0xe7   : > { %v2266_v58 = vpack.c.bf16 %v1003_v33, %v1001_v20  ;;  %v1009_v33 = vld [vmem:[#allocation6 + $0x1e8] sm:$0xff]  ;;  %2544 = vset.pattern.permute.xlu0 %v2685_v41  ;;  %2545 = vset.pattern.permute.xlu1 %v2685_v41 }
  0xe8   : > { %2257 = vmatpush1.bf16.msra.mxu0 %v2256_v5  ;;  %v2328_v5 = vpack.c.bf16 %v1133_v15, %v1131_v54  ;;  %v1139_v54 = vld [vmem:[#allocation7 + $0x1c0] sm:$0xff]  ;;  %v1141_v15 = vld [vmem:[#allocation7 + $0x1d0] sm:$0xff] }
  0xe9   : > { %2321 = vmatpush1.bf16.msra.mxu1 %v2320_v51  ;;  %2259 = vmatprep.subr.bf16.mxu0 %v2258_v24  ;;  %v1000_v51 = vld [vmem:[#allocation6 + $0x1a0] sm:$0xff]  ;;  %v1002_v24 = vld [vmem:[#allocation6 + $0x1b0] sm:$0xff]  ;;  %v2336_v20 = vpack.c.bf16 %v1141_v15, %v1139_v54 }
  0xea   : > { %2323 = vmatprep.subr.bf16.mxu1 %v2322_v11  ;;  %v1007_v11 = vld [vmem:[#allocation6 + $0x1d8] sm:$0xff]  ;;  %v2268_v46 = vpack.c.bf16 %v1002_v24, %v1000_v51  ;;  %v1010_v51 = vld [vmem:[#allocation6 + $0x1f0] sm:$0xff] }
  0xeb   : > { %v2270_v56 = vpack.c.bf16 %v1007_v11, %v1005_v47  ;;  %v1224_v11 = vld [vmem:[%s3350_s2] sm:$0x7] }
  0xec   : > { %2261 = vmatpush1.bf16.msra.mxu0 %v2260_v49  ;;  %v2332_v49 = vpack.c.bf16 %v1137_v45, %v1135_v43  ;;  %v1145_v45 = vld [vmem:[#allocation7 + $0x1f0] sm:$0xff]  ;;  %1228 = vperm.xlu0 %2544, %v1224_v11  }
  0xed   : > { %2325 = vmatpush1.bf16.msra.mxu1 %v2324_v19  ;;  %2263 = vmatprep.subr.bf16.mxu0 %v2262_v63  ;;  %v1004_v19 = vld [vmem:[#allocation6 + $0x1c0] sm:$0xff]  ;;  %v1006_v63 = vld [vmem:[#allocation6 + $0x1d0] sm:$0xff] }
  0xee   : > { %2327 = vmatprep.subr.bf16.mxu1 %v2326_v1  ;;  %v2272_v1 = vpack.c.bf16 %v1006_v63, %v1004_v19  ;;  %v1481_v19 = vld [vmem:[%s3359_s11] sm:$0xff] }
  0xef   : > { %v1578_v63 = vld [vmem:[%s3361_s13] sm:$0x7] }
  0xf0   : > { %2265 = vmatpush1.bf16.msra.mxu0 %v2264_v59  ;;  %v2274_v59 = vpack.c.bf16 %v1011_v23, %v1009_v33  ;;  %1235 = vperm.xlu0 %2544, %v1225_v28   ;;  %v2686_v33 = vmov 839922192  }
  0xf1   : > { %2329 = vmatpush1.bf16.msra.mxu1 %v2328_v5  ;;  %2267 = vmatprep.subr.bf16.mxu0 %v2266_v58  ;;  %v1146_v5 = vld [vmem:[#allocation7 + $0x1f8] sm:$0xff]  ;;  %v1008_v58 = vld [vmem:[#allocation6 + $0x1e0] sm:$0xff]  ;;  %v1241_v23 = vunpack.c.l.s4 %v2686_v33 }
  0xf2   : > { %2331 = vmatprep.subr.bf16.mxu1 %v2330_v27  ;;  %v2338_v24 = vpack.c.bf16 %v1146_v5, %v1144_v6  ;;  %v2276_v43 = vpack.c.bf16 %v1010_v51, %v1008_v58  ;;  %v1143_v27 = vld [vmem:[#allocation7 + $0x1e0] sm:$0xff] }
  0xf3   : > { %v2340_v47 = vpack.c.bf16 %v1145_v45, %v1143_v27  ;;  %v1242_v58 = vunpack.c.0.s8 %v1241_v23  ;;  %v1272_v33 = vld [vmem:[%s3357_s9] sm:$0xff]  ;;  %v1275_v23 = vld [vmem:[%s3357_s9 + $0x18] sm:$0xff] }
  0xf4   : > { %2269 = vmatpush1.bf16.msra.mxu0 %v2268_v46  ;;  %v1274_v46 = vld [vmem:[%s3357_s9 + $0x10] sm:$0xff]  ;;  %1282 = vperm.xlu1 %2545, %v1272_v33  }
  0xf5   : > { %2333 = vmatpush1.bf16.msra.mxu1 %v2332_v49  ;;  %2271 = vmatprep.subr.bf16.mxu0 %v2270_v56  ;;  %v1276_v49 = vld [vmem:[%s3357_s9 + $0x20] sm:$0xff]  ;;  %v1278_v56 = vld [vmem:[%s3357_s9 + $0x30] sm:$0xff] }
  0xf6   : > { %2335 = vmatprep.subr.bf16.mxu1 %v2334_v55  ;;  %1292 = vperm.xlu0 %2544, %v1274_v46   ;;  %v863_v55 = vlaneseq }
  0xf8   : > { %2273 = vmatpush1.bf16.msra.mxu0 %v2272_v1  ;;  %v3162_v54 = vshrl.u32 %v863_v55, 7  ;;  %v3168_v1 = vld [vmem:[%s639_s28] sm:$0x3]  ;;  %v2687_v55 = vmov 0.0  }
  0xf9   : > { %2337 = vmatpush1.bf16.msra.mxu1 %v2336_v20  ;;  %2275 = vmatprep.subr.bf16.mxu0 %v2274_v59 }
  0xfa   : > { %2339 = vmatprep.subr.bf16.mxu1 %v2338_v24  ;;  %1302 = vperm.xlu0 %2544, %v1276_v49   ;;  %v869_v15 = vsub.s32 1, %v3162_v54  ;;  %v865_v20 = vsub.s32 0, %v3162_v54  ;;  %v1245_v41 = vsub.s32 %v1242_v58, %v3162_v54 }
  0xfc   : > { %2277 = vmatpush1.bf16.msra.mxu0 %v2276_v43  ;;  %v870_v6 = vrot.slane %v3168_v1, %v869_v15  ;;  %v866_v59 = vrot.slane %v3168_v1, %v865_v20 }
  0xfd   : > { %2341 = vmatpush1.bf16.msra.mxu1 %v2340_v47 }
  0xfe   : > { %1312 = vperm.xlu0 %2544, %v1278_v56  }
 0x102   : > { %1485 = vperm.xlu0 %2544, %v1481_v19  }
 0x106   : > { %1581 = vperm.xlu0 %2544, %v1578_v63  }
 0x16b   : > { %v1229_v28 = vpop.permute.xlu0 %1228 }
 0x16c   : > { %v1246_v46 = vrot.slane %v1229_v28, %v1245_v41 }
 0x16e   : > { %v1248_v49 = vsub.f32 %v3076_v22, %v1246_v46  ;;  %v1273_v22 = vld [vmem:[%s3357_s9 + $0x8] sm:$0xff] }
 0x16f   : > { %v1236_v56 = vpop.permute.xlu0 %1235  ;;  %1287 = vperm.xlu1 %2545, %v1273_v22  }
 0x170   : > { %v1255_v19 = vrot.slane %v1236_v56, %v1245_v41 }
 0x172   : > { %v3183_v63 = vmul.f32 %v1255_v19, %v1248_v49 }
 0x173   : > { %1297 = vperm.xlu1 %2545, %v1275_v23   ;;  %v1264_v23 = vld [vmem:[%s3356_s8] sm:$0xff] }
 0x174   : > { %1263 = vst [vmem:[%s644_s16] sm:$0x77] %v3183_v63  ;;  %s3441_s16 = sld [smem:[#allocation41_spill]] }
 0x192   : > { %v857_v5 = vpop.f32.mrb[0].mxu0 }
 0x193   : > { %v941_v51 = vpop.f32.mrb[0].mxu1  ;;  %v859_v24 = vpop.f32.mrb[1].mxu0  ;;  %v873_v45 = vmul.f32 %v866_v59, %v857_v5  ;;  %v1482_v5 = vld [vmem:[%s3359_s11 + $0x8] sm:$0xff] }
 0x194   : > { %v874_v43 = vmul.f32 %v870_v6, %v859_v24  ;;  %v943_v27 = vpop.f32.mrb[1].mxu1  ;;  %v946_v11 = vmul.f32 %v941_v51, %v866_v59  ;;  %v1279_v59 = vld [vmem:[%s3357_s9 + $0x38] sm:$0xff] }
 0x195   : > { %v947_v47 = vmul.f32 %v943_v27, %v870_v6  ;;  %v1277_v6 = vld [vmem:[%s3357_s9 + $0x28] sm:$0xff] }
 0x196   : > { %1076 = vmatprep.mubr.f32.mxu0 %v874_v43  ;;  %1307 = vperm.xlu1 %2545, %v1277_v6  }
 0x197   : > { %1211 = vmatprep.mubr.f32.mxu1 %v947_v47  ;;  %1077 = vmatmul.mubr.f32.vlgmr.msra.gmra.mrb[2].mxu0 %v873_v45 }
 0x198   : > { %1212 = vmatmul.mubr.f32.vlgmr.msra.gmra.mrb[2].mxu1 %v946_v11  ;;  %1414 = vmatprep.mubr.f32.mxu0 %v2687_v55 }
 0x199   : > { %1564 = vmatprep.mubr.f32.mxu1 %v2687_v55 }
 0x19a   : > { %1317 = vperm.xlu1 %2545, %v1279_v59  }
 0x19e   : > { %1490 = vperm.xlu1 %2545, %v1482_v5  }
 0x26a   : > { %v1078_v58 = vpop.f32.mrb[2].mxu0 }
 0x26b   : > { %v1213_v51 = vpop.f32.mrb[2].mxu1  ;;  %v1080_v24 = vpop.f32.mrb[3].mxu0 }
 0x26c   : > { %v1218_v43 = vsub.f32 %v1078_v58, %v1213_v51  ;;  %v1215_v27 = vpop.f32.mrb[3].mxu1 }
 0x26d   : > { %v1219_v45 = vsub.f32 %v1080_v24, %v1215_v27 }
 0x26e   : > { %v1220_v47 = vmax.f32 %v1218_v43, 0.0 }
 0x26f   : > { %v1221_v11 = vmax.f32 %v1219_v45, 0.0 }
 0x270   : > { %v1222_v41 = vmin.f32 %v1220_v47, 1.0 }
 0x271   : > { %v1223_v46 = vmin.f32 %v1221_v11, 1.0 }
 0x272   : > { %v1231_v49 = vsub.f32 %v1222_v41, %v1229_v28 }
 0x273   : > { %v1232_v19 = vsub.f32 %v1223_v46, %v1229_v28  ;;  %v1265_v28 = vld [vmem:[%s3356_s8 + $0x8] sm:$0xff] }
 0x274   : > { %v1238_v33 = vmul.f32 %v1236_v56, %v1231_v49 }
 0x275   : > { %v1239_v22 = vmul.f32 %v1236_v56, %v1232_v19  ;;  %v1266_v56 = vld [vmem:[%s3356_s8 + $0x10] sm:$0xff] }
 0x277   : > { %v1260_v6 = vcombine.low %v1238_v33, %v1239_v22  ;;  %2067 = vmatprep.subr.msk.mxu0 %vm1345_vm0, %v1239_v22 }
 0x278   : > { %2068 = vmatpush1.msk.msra.mxu0 %vm1345_vm0, %v1238_v33 }
 0x279   : > { %1262 = vst [vmem:[%s649_s10] sm:$0x77] %v1260_v6  ;;  %2069 = vmatmul.mubr.msk.f32.vlgmr.msra.gmra.mrb[4].mxu0 %vm1320_vm1, %v1264_v23  ;;  %2363 = vmatprep.subr.bf16.mxu0 %v2929_v3  ;;  %v1267_v3 = vld [vmem:[%s3356_s8 + $0x18] sm:$0xff] }
 0x27a   : > { %1420 = vmatprep.mubr.f32.mxu0 %v2687_v55  ;;  %2365 = vmatpush1.bf16.msra.mxu0 %v2933_v8  ;;  %v1268_v8 = vld [vmem:[%s3356_s8 + $0x20] sm:$0xff] }
 0x27b   : > { %2367 = vmatprep.subr.bf16.mxu0 %v2940_v16  ;;  %v1269_v16 = vld [vmem:[%s3356_s8 + $0x28] sm:$0xff] }
 0x27d   : > { %2070 = vmatmul.mubr.msk.f32.gmra.mrb[6].mxu0 %vm1320_vm1, %v1265_v28 }
 0x27e   : > { %1426 = vmatprep.mubr.f32.mxu0 %v2687_v55  ;;  %2369 = vmatpush1.bf16.msra.mxu0 %v2945_v21  ;;  %v1270_v21 = vld [vmem:[%s3356_s8 + $0x30] sm:$0xff] }
 0x27f   : > { %2371 = vmatprep.subr.bf16.mxu0 %v2951_v26  ;;  %v1271_v26 = vld [vmem:[%s3356_s8 + $0x38] sm:$0xff] }
 0x281   : > { %2071 = vmatmul.mubr.msk.f32.gmra.mrb[8].mxu0 %vm1320_vm1, %v1266_v56 }
 0x282   : > { %1432 = vmatprep.mubr.f32.mxu0 %v2687_v55  ;;  %2373 = vmatpush1.bf16.msra.mxu0 %v2956_v34  ;;  %v1283_v34 = vpop.permute.xlu1 %1282 }
 0x283   : > { %2375 = vmatprep.subr.bf16.mxu0 %v2962_v39 }
 0x285   : > { %2072 = vmatmul.mubr.msk.f32.gmra.mrb[10].mxu0 %vm1320_vm1, %v1267_v3 }
 0x286   : > { %1438 = vmatprep.mubr.f32.mxu0 %v2687_v55  ;;  %2377 = vmatpush1.bf16.msra.mxu0 %v2968_v50 }
 0x287   : > { %2379 = vmatprep.subr.bf16.mxu0 %v2974_v52 }
 0x289   : > { %2073 = vmatmul.mubr.msk.f32.gmra.mrb[12].mxu0 %vm1320_vm1, %v1268_v8 }
 0x28a   : > { %1444 = vmatprep.mubr.f32.mxu0 %v2687_v55  ;;  %2381 = vmatpush1.bf16.msra.mxu0 %v2980_v62  ;;  %v1288_v62 = vpop.permute.xlu1 %1287 }
 0x28b   : > { %2383 = vmatprep.subr.bf16.mxu0 %v2986_v0 }
 0x28d   : > { %2074 = vmatmul.mubr.msk.f32.gmra.mrb[14].mxu0 %vm1320_vm1, %v1269_v16 }
 0x28e   : > { %1450 = vmatprep.mubr.f32.mxu0 %v2687_v55  ;;  %2385 = vmatpush1.bf16.msra.mxu0 %v2992_v14 }
 0x28f   : > { %2387 = vmatprep.subr.bf16.mxu0 %v2998_v18 }
 0x291   : > { %2075 = vmatmul.mubr.msk.f32.gmra.mrb[16].mxu0 %vm1320_vm1, %v1270_v21 }
 0x292   : > { %1456 = vmatprep.mubr.f32.mxu0 %v2687_v55  ;;  %2389 = vmatpush1.bf16.msra.mxu0 %v3004_v32 }
 0x293   : > { %2391 = vmatprep.subr.bf16.mxu0 %v3010_v35 }
 0x295   : > { %2076 = vmatmul.mubr.msk.f32.gmra.mrb[18].mxu0 %vm1320_vm1, %v1271_v26 }
 0x296   : > { %2393 = vmatpush1.bf16.msra.mxu0 %v3016_v48 }
 0x297   : > { %2395 = vmatprep.subr.bf16.mxu0 %v3023_v53 }
 0x29a   : > { %2397 = vmatpush1.bf16.msra.mxu0 %v3029_v4 }
 0x29b   : > { %2399 = vmatprep.subr.bf16.mxu0 %v3040_v9 }
 0x29e   : > { %2401 = vmatpush1.bf16.msra.mxu0 %v3046_v29 }
 0x29f   : > { %2403 = vmatprep.subr.bf16.mxu0 %v3055_v36 }
 0x2a2   : > { %2405 = vmatpush1.bf16.msra.mxu0 %v3065_v57 }
 0x2a3   : > { %2407 = vmatprep.subr.bf16.mxu0 %v3071_v61  ;;  %v1293_v61 = vpop.permute.xlu0 %1292 }
 0x2a6   : > { %2409 = vmatpush1.bf16.msra.mxu0 %v3081_v37 }
 0x2a7   : > { %2411 = vmatprep.subr.bf16.mxu0 %v3087_v42  ;;  %v1298_v42 = vpop.permute.xlu1 %1297  ;;  %v1303_v27 = vpop.permute.xlu0 %1302 }
 0x2aa   : > { %2413 = vmatpush1.bf16.msra.mxu0 %v3093_v2 }
 0x2ab   : > { %2415 = vmatprep.subr.bf16.mxu0 %v3099_v13  ;;  %v1308_v11 = vpop.permute.xlu1 %1307  ;;  %v1313_v16 = vpop.permute.xlu0 %1312 }
 0x2ae   : > { %2417 = vmatpush1.bf16.msra.mxu0 %v3105_v40 }
 0x2af   : > { %2419 = vmatprep.subr.bf16.mxu0 %v3111_v44 }
 0x2b2   : > { %2421 = vmatpush1.bf16.msra.mxu0 %v3117_v10 }
 0x2b3   : > { %2423 = vmatprep.subr.bf16.mxu0 %v3123_v60 }
 0x2b6   : > { %2425 = vmatpush1.bf16.msra.mxu0 %v3129_v31 }
 0x34c   : > { %v1416_v39 = vpop.f32.mrb[4].mxu0 }
 0x34d   : > { %v1418_v50 = vpop.f32.mrb[5].mxu0  ;;  %v1417_v52 = vadd.f32 %v1416_v39, %v1283_v34 }
 0x34e   : > { %v1419_v0 = vadd.f32 %v1418_v50, %v1283_v34  ;;  %v1318_v34 = vpop.permute.xlu1 %1317 }
 0x34f   : > { %v1463_v48 = vmax.f32 %v1417_v52, 0.0 }
 0x350   : > { %v1422_v14 = vpop.f32.mrb[6].mxu0  ;;  %v1464_v4 = vmax.f32 %v1419_v0, 0.0 }
 0x351   : > { %v1423_v18 = vadd.f32 %v1422_v14, %v1288_v62  ;;  %v1424_v32 = vpop.f32.mrb[7].mxu0 }
 0x352   : > { %v1425_v35 = vadd.f32 %v1424_v32, %v1288_v62 }
 0x353   : > { %v1465_v53 = vmax.f32 %v1423_v18, 0.0 }
 0x354   : > { %v1466_v9 = vmax.f32 %v1425_v35, 0.0  ;;  %v1428_v29 = vpop.f32.mrb[8].mxu0 }
 0x355   : > { %v2344_v36 = vpack.c.bf16 %v1465_v53, %v1463_v48  ;;  %v1430_v57 = vpop.f32.mrb[9].mxu0  ;;  %v1429_v40 = vadd.f32 %v1428_v29, %v1293_v61 }
 0x356   : > { %v2342_v37 = vpack.c.bf16 %v1466_v9, %v1464_v4  ;;  %v1431_v2 = vadd.f32 %v1430_v57, %v1293_v61  ;;  %v1479_v4 = vld [vmem:[%s3441_s16] sm:$0xff]  ;;  %v1480_v9 = vld [vmem:[%s3441_s16 + $0x8] sm:$0xff]  ;;  %v1486_v57 = vpop.permute.xlu0 %1485  ;;  %v1491_v61 = vpop.permute.xlu1 %1490 }
 0x357   : > { %v1467_v60 = vmax.f32 %v1429_v40, 0.0 }
 0x358   : > { %v1434_v10 = vpop.f32.mrb[10].mxu0  ;;  %2343 = vmatprep.subr.bf16.mxu1 %v2342_v37  ;;  %v1468_v5 = vmax.f32 %v1431_v2, 0.0 }
 0x359   : > { %v1435_v13 = vadd.f32 %v1434_v10, %v1298_v42  ;;  %v1436_v31 = vpop.f32.mrb[11].mxu0  ;;  %2345 = vmatpush1.bf16.msra.mxu1 %v2344_v36 }
 0x35a   : > { %v1437_v44 = vadd.f32 %v1436_v31, %v1298_v42 }
 0x35b   : > { %v1469_v59 = vmax.f32 %v1435_v13, 0.0 }
 0x35c   : > { %v1470_v58 = vmax.f32 %v1437_v44, 0.0  ;;  %v1440_v51 = vpop.f32.mrb[12].mxu0 }
 0x35d   : > { %v2348_v24 = vpack.c.bf16 %v1469_v59, %v1467_v60  ;;  %v1442_v43 = vpop.f32.mrb[13].mxu0  ;;  %v1441_v47 = vadd.f32 %v1440_v51, %v1303_v27  ;;  %v1577_v60 = vld [vmem:[%s3442_s1] sm:$0x7]  ;;  %v3444_v59 = vld [vmem:[#allocation14_spill] sm:$0xff] }
 0x35e   : > { %v2346_v45 = vpack.c.bf16 %v1470_v58, %v1468_v5  ;;  %v1443_v41 = vadd.f32 %v1442_v43, %v1303_v27  ;;  %v3445_v5 = vld [vmem:[#allocation15_spill] sm:$0xff]  ;;  %v3446_v58 = vld [vmem:[#allocation16_spill] sm:$0xff]  ;;  %v3448_v51 = vld [vmem:[#allocation18_spill] sm:$0xff] }
 0x35f   : > { %v1471_v22 = vmax.f32 %v1441_v47, 0.0  ;;  %v3455_v43 = vld [vmem:[#allocation25_spill] sm:$0xff]  ;;  %v3456_v27 = vld [vmem:[#allocation26_spill] sm:$0xff]  ;;  %v3458_v47 = vld [vmem:[#allocation28_spill] sm:$0xff] }
 0x360   : > { %v1446_v46 = vpop.f32.mrb[14].mxu0  ;;  %2347 = vmatprep.subr.bf16.mxu1 %v2346_v45  ;;  %v1472_v6 = vmax.f32 %v1443_v41, 0.0  ;;  %v3457_v45 = vld [vmem:[#allocation27_spill] sm:$0xff]  ;;  %v3460_v41 = vld [vmem:[#allocation30_spill] sm:$0xff] }
 0x361   : > { %v1447_v49 = vadd.f32 %v1446_v46, %v1308_v11  ;;  %v1448_v19 = vpop.f32.mrb[15].mxu0  ;;  %2349 = vmatpush1.bf16.msra.mxu1 %v2348_v24  ;;  %v3454_v24 = vld [vmem:[#allocation24_spill] sm:$0xff]  ;;  %v3461_v46 = vld [vmem:[#allocation31_spill] sm:$0xff] }
 0x362   : > { %v1449_v33 = vadd.f32 %v1448_v19, %v1308_v11  ;;  %v3459_v11 = vld [vmem:[#allocation29_spill] sm:$0xff] }
 0x363   : > { %v1473_v23 = vmax.f32 %v1447_v49, 0.0  ;;  %v3462_v49 = vld [vmem:[#allocation32_spill] sm:$0xff]  ;;  %v3463_v19 = vld [vmem:[#allocation33_spill] sm:$0xff] }
 0x364   : > { %v1474_v28 = vmax.f32 %v1449_v33, 0.0  ;;  %v1452_v56 = vpop.f32.mrb[16].mxu0  ;;  %v3464_v33 = vld [vmem:[#allocation34_spill] sm:$0xff] }
 0x365   : > { %v2352_v3 = vpack.c.bf16 %v1473_v23, %v1471_v22  ;;  %v1454_v8 = vpop.f32.mrb[17].mxu0  ;;  %v1453_v26 = vadd.f32 %v1452_v56, %v1313_v16  ;;  %v3465_v22 = vld [vmem:[#allocation35_spill] sm:$0xff]  ;;  %v3466_v23 = vld [vmem:[#allocation36_spill] sm:$0xff]  ;;  %v1582_v56 = vpop.permute.xlu0 %1581 }
 0x366   : > { %v2350_v21 = vpack.c.bf16 %v1474_v28, %v1472_v6  ;;  %v1455_v39 = vadd.f32 %v1454_v8, %v1313_v16  ;;  %v3467_v6 = vld [vmem:[#allocation37_spill] sm:$0xff]  ;;  %v3468_v28 = vld [vmem:[#allocation38_spill] sm:$0xff] }
 0x367   : > { %v1475_v14 = vmax.f32 %v1453_v26, 0.0  ;;  %v1665_v26 = vcombine.high %v3183_v63, %v3183_v63 }
 0x368   : > { %v1458_v50 = vpop.f32.mrb[18].mxu0  ;;  %2351 = vmatprep.subr.bf16.mxu1 %v2350_v21  ;;  %v1476_v32 = vmax.f32 %v1455_v39, 0.0 }
 0x369   : > { %v1459_v52 = vadd.f32 %v1458_v50, %v1318_v34  ;;  %v1460_v62 = vpop.f32.mrb[19].mxu0  ;;  %2353 = vmatpush1.bf16.msra.mxu1 %v2352_v3 }
 0x36a   : > { %v1461_v0 = vadd.f32 %v1460_v62, %v1318_v34 }
 0x36b   : > { %v1477_v18 = vmax.f32 %v1459_v52, 0.0  ;;  %v1811_v52 = vsub.f32 1.0, %v3168_v1 }
 0x36c   : > { %v1478_v35 = vmax.f32 %v1461_v0, 0.0 }
 0x36d   : > { %v2356_v48 = vpack.c.bf16 %v1477_v18, %v1475_v14 }
 0x36e   : > { %v2354_v53 = vpack.c.bf16 %v1478_v35, %v1476_v32 }
 0x370   : > { %2355 = vmatprep.subr.bf16.mxu1 %v2354_v53 }
 0x371   : > { %2357 = vmatpush1.bf16.msra.mxu1 %v2356_v48  ;;  %v1822_v48 = vrot.slane %v1811_v52, %v865_v20 }
 0x374   : > { %2077 = vmatmul.mubr.msk.f32.vlgmr.msra.gmra.mrb[4].mxu1 %vm1493_vm2, %v1479_v4 }
 0x375   : > { %1570 = vmatprep.mubr.f32.mxu1 %v2687_v55 }
 0x378   : > { %2078 = vmatmul.mubr.msk.f32.gmra.mrb[6].mxu1 %vm1493_vm2, %v1480_v9 }
 0x379   : > { %1652 = vmatprep.mubr.f32.mxu1 %v2687_v55  ;;  %v3443_v55 = vld [vmem:[#allocation13_spill] sm:$0xff] }
 0x447   : > { %v1566_v29 = vpop.f32.mrb[4].mxu1 }
 0x448   : > { %v1568_v36 = vpop.f32.mrb[5].mxu1  ;;  %v1567_v40 = vadd.f32 %v1566_v29, %v1486_v57 }
 0x449   : > { %v1569_v10 = vadd.f32 %v1568_v36, %v1486_v57 }
 0x44b   : > { %v1572_v37 = vpop.f32.mrb[6].mxu1 }
 0x44c   : > { %v1573_v42 = vadd.f32 %v1572_v37, %v1491_v61  ;;  %v1574_v2 = vpop.f32.mrb[7].mxu1 }
 0x44d   : > { %v1575_v13 = vadd.f32 %v1574_v2, %v1491_v61 }
 0x44e   : > { %v2360_v31 = vpack.c.bf16 %v1573_v42, %v1567_v40 }
 0x44f   : > { %v2358_v44 = vpack.c.bf16 %v1575_v13, %v1569_v10 }
 0x451   : > { %2359 = vmatprep.subr.bf16.mxu1 %v2358_v44 }
 0x452   : > { %2361 = vmatpush1.bf16.msra.mxu1 %v2360_v31 }
 0x453   : > { %2427 = vmatprep.subr.bf16.mxu1 %v2931_v7  ;;  %v3447_v7 = vld [vmem:[#allocation17_spill] sm:$0xff] }
 0x455   : > { %2079 = vmatmul.mubr.msk.f32.vlgmr.msra.gmra.mrb[8].mxu1 %vm1584_vm3, %v1577_v60 }
 0x456   : > { %2429 = vmatpush1.bf16.msra.mxu1 %v2936_v12  ;;  %v3449_v12 = vld [vmem:[#allocation19_spill] sm:$0xff] }
 0x457   : > { %2431 = vmatprep.subr.bf16.mxu1 %v2942_v17  ;;  %v3450_v17 = vld [vmem:[#allocation20_spill] sm:$0xff] }
 0x45a   : > { %2433 = vmatpush1.bf16.msra.mxu1 %v2949_v25  ;;  %v3451_v25 = vld [vmem:[#allocation21_spill] sm:$0xff] }
 0x45b   : > { %2435 = vmatprep.subr.bf16.mxu1 %v2953_v30  ;;  %v3452_v30 = vld [vmem:[#allocation22_spill] sm:$0xff] }
 0x45e   : > { %2437 = vmatpush1.bf16.msra.mxu1 %v2960_v38  ;;  %v3453_v38 = vld [vmem:[#allocation23_spill] sm:$0xff] }
 0x45f   : > { %2439 = vmatprep.subr.bf16.mxu1 %v3443_v55 }
 0x462   : > { %2441 = vmatpush1.bf16.msra.mxu1 %v3444_v59 }
 0x463   : > { %2443 = vmatprep.subr.bf16.mxu1 %v3445_v5 }
 0x466   : > { %2445 = vmatpush1.bf16.msra.mxu1 %v3446_v58 }
 0x467   : > { %2447 = vmatprep.subr.bf16.mxu1 %v3447_v7 }
 0x46a   : > { %2449 = vmatpush1.bf16.msra.mxu1 %v3448_v51 }
 0x46b   : > { %2451 = vmatprep.subr.bf16.mxu1 %v3449_v12 }
 0x46e   : > { %2453 = vmatpush1.bf16.msra.mxu1 %v3450_v17 }
 0x46f   : > { %2455 = vmatprep.subr.bf16.mxu1 %v3451_v25 }
 0x472   : > { %2457 = vmatpush1.bf16.msra.mxu1 %v3452_v30 }
 0x473   : > { %2459 = vmatprep.subr.bf16.mxu1 %v3453_v38 }
 0x476   : > { %2461 = vmatpush1.bf16.msra.mxu1 %v3454_v24 }
 0x477   : > { %2463 = vmatprep.subr.bf16.mxu1 %v3455_v43 }
 0x47a   : > { %2465 = vmatpush1.bf16.msra.mxu1 %v3456_v27 }
 0x47b   : > { %2467 = vmatprep.subr.bf16.mxu1 %v3457_v45 }
 0x47e   : > { %2469 = vmatpush1.bf16.msra.mxu1 %v3458_v47 }
 0x47f   : > { %2471 = vmatprep.subr.bf16.mxu1 %v3459_v11 }
 0x482   : > { %2473 = vmatpush1.bf16.msra.mxu1 %v3460_v41 }
 0x483   : > { %2475 = vmatprep.subr.bf16.mxu1 %v3461_v46 }
 0x486   : > { %2477 = vmatpush1.bf16.msra.mxu1 %v3462_v49 }
 0x487   : > { %2479 = vmatprep.subr.bf16.mxu1 %v3463_v19 }
 0x48a   : > { %2481 = vmatpush1.bf16.msra.mxu1 %v3464_v33 }
 0x48b   : > { %2483 = vmatprep.subr.bf16.mxu1 %v3465_v22 }
 0x48e   : > { %2485 = vmatpush1.bf16.msra.mxu1 %v3466_v23 }
 0x48f   : > { %2487 = vmatprep.subr.bf16.mxu1 %v3467_v6 }
 0x492   : > { %2489 = vmatpush1.bf16.msra.mxu1 %v3468_v28 }
 0x528   : > { %v1654_v3 = vpop.f32.mrb[8].mxu1 }
 0x529   : > { %v1655_v8 = vadd.f32 %v1654_v3, %v1582_v56  ;;  %v1656_v16 = vpop.f32.mrb[9].mxu1 }
 0x52a   : > { %v1657_v21 = vadd.f32 %v1656_v16, %v1582_v56 }
 0x52b   : > { %v1667_v50 = vsub.f32 %v1655_v8, %v3183_v63  ;;  %v1826_v63 = vrot.slane %v1811_v52, %v869_v15 }
 0x52c   : > { %v1661_v34 = vcombine.low %v1655_v8, %v1657_v21  ;;  %v1668_v39 = vsub.f32 %v1657_v21, %v1665_v26 }
 0x52e   : > { %1663 = vst [vmem:[%s654_s26] sm:$0x77] %v1661_v34  ;;  %1733 = vmatprep.mubr.f32.mxu0 %v1668_v39  ;;  %1804 = vmatprep.mubr.f32.mxu1 %v1668_v39 }
 0x52f   : > { %1734 = vmatmul.mubr.f32.vlgmr.msra.gmra.mrb[20].mxu0 %v1667_v50  ;;  %1805 = vmatmul.mubr.f32.vlgmr.msra.gmra.mrb[10].mxu1 %v1667_v50 }
 0x602   : > { %v1735_v62 = vpop.f32.mrb[20].mxu0  ;;  %v1806_v0 = vpop.f32.mrb[10].mxu1 }
 0x603   : > { %v1812_v14 = vmul.f32 %v1735_v62, %v1735_v62  ;;  %v1814_v18 = vmul.f32 %v1806_v0, %v1806_v0  ;;  %v1737_v32 = vpop.f32.mrb[21].mxu0  ;;  %v1808_v35 = vpop.f32.mrb[11].mxu1 }
 0x604   : > { %v1813_v53 = vmul.f32 %v1737_v32, %v1737_v32  ;;  %v1815_v4 = vmul.f32 %v1808_v35, %v1808_v35 }
 0x605   : > { %v1816_v9 = vadd.f32 %v1814_v18, %v1812_v14 }
 0x606   : > { %v1817_v29 = vadd.f32 %v1815_v4, %v1813_v53 }
 0x607   : > { %v1829_v36 = vmul.f32 %v1822_v48, %v1816_v9 }
 0x608   : > { %v1830_v57 = vmul.f32 %v1826_v63, %v1817_v29 }
 0x609   : > { %v1831_v1 = vsel %vm1345_vm0, %v1829_v36, 0.0 }
 0x60a   : > { %v1832_v61 = vsel %vm1345_vm0, %v1830_v57, 0.0 }
 0x60b   : > { %v1833_v37 = vadd.f32 %v1832_v61, %v1831_v1 }
 0x60d   : > { %1834 = vadd.xlane.f32.xlu1 %v1833_v37 }
 0x69a   : > { %v1835_v40 = vpop.xlane.xlu1 %1834 }
 0x69b   : > { %v1836_v42 = vsel %vm1345_vm0, %v1835_v40, 0.0 }
 0x69c   : > { %v1837_v20 = vrot.slane %v1836_v42, 4 }
 0x69e   : > { %v1838_v2 = vadd.f32 %v1837_v20, %v1836_v42 }
 0x6a0   : > { %v1839_v10 = vrot.slane %v1838_v2, 2 }
 0x6a2   : > { %v1840_v13 = vadd.f32 %v1839_v10, %v1838_v2 }
 0x6a4   : > { %v1841_v54 = vrot.slane %v1840_v13, 1 }
 0x6a6   : > { %v1842_v15 = vadd.f32 %v1841_v54, %v1840_v13 }
 0x6a8   : > { %v1843_v31 = vmul.f32 0.00390625, %v1842_v15 }
 0x6aa   : > { %1845 = vst.msk [vmem:[%s657_s22] sm:$0x1] %vm1844_vm4, %v1843_v31 }
 0x6ab PF: > { %s3471_s23 = sld [smem:[#allocation12_spill]] }
 0x6b1   : > { %s31_s24 = sadd.s32 1, %s3471_s23  }
 0x6b2   : > { %p28_p6 = scmp.ge.s32.totalorder %s31_s24, 4  }
 0x6b4   :  { %30 = sbr.rel (!%p28_p6) target bundleno = 10 (0xa), region = 162 }
 0x6bb   :  { %1911 = vsyncpa [#allocation3], 1 }
 0x6bc   :  { %1913 = vsyncpa [#allocation3 + $0x1], 1 }
 0x6bd   :  { %1914 = vsyncpa [#allocation5], 1 }
 0x6be   :  { %1915 = vsyncpa [#allocation8], 1 }

</bundles_post_ra>
